<compile_context>
chip_gen: v6e
topology: v6e:2x2x1
jax: 0.10.0
libtpu: 0.0.40
codegen_flags: <defaults>
</compile_context>

<pallas_src>
import functools

import jax
import jax.numpy as jnp
from jax.experimental import pallas as pl
from jax.experimental.pallas import tpu as pltpu

_INNER_MLP_MULT = 2
_BN_EPS = 1e-5
_LANE = 128        # channel dims padded to multiples of this (lane-dense, full MXU tiles)
_SUBLANE_BF16 = 16  # bf16 packs [16,128] per vreg -> pad feature row counts to x16


def _round_up(v, m):
    return ((v + m - 1) // m) * m


def _pad2d(x, rows, cols):
    return jnp.zeros((rows, cols), x.dtype).at[: x.shape[0], : x.shape[1]].set(x)


# ----------------------------- Pallas kernel -----------------------------
def _bn_relu(x, gamma, beta, row_mask, inv_rows):
    """Training-mode BatchNorm1d + ReLU, two-pass masked batch statistics (f32).

    Stats are taken over real rows only (row_mask), so row padding never changes numerics.
    All padded inputs are exactly zero, so multiply-masking is NaN-safe.
    """
    xm = x * row_mask
    mu = jnp.sum(xm, axis=0, keepdims=True) * inv_rows
    d = x - mu
    var = jnp.sum(d * d * row_mask, axis=0, keepdims=True) * inv_rows
    y = d * jax.lax.rsqrt(var + _BN_EPS) * gamma + beta
    return jnp.maximum(y, 0.0)


def _conv_layer_kernel(
    # graph indices (SMEM)
    ep_ref,
    # features
    node_ref, edge_ref,
    # edge MLP params (weights bf16, BN params f32)
    e_w1e_ref, e_w1n_ref, e_w1s_ref, e_g1_ref, e_b1_ref, e_w2_ref, e_g2_ref, e_b2_ref,
    # node MLP params
    n_w1a_ref, n_w1b_ref, n_g1_ref, n_b1_ref, n_w2_ref, n_g2_ref, n_b2_ref,
    # outputs (bf16)
    edge_out_ref, node_out_ref,
    # scratch
    n2e_s, pn_s, eo_s, e2n_s,
    *, n_edge_rows, n_node_rows,
):
    f32 = jnp.float32
    bf16 = jnp.bfloat16
    e2p = edge_ref.shape[0]     # padded 2E
    npad = node_ref.shape[0]    # padded N
    unroll = n_edge_rows <= 64  # fully unroll the tiny toy-size loops for LLO visibility

    # zero scratches: padded rows must be exactly 0; e2n is the scatter accumulator
    n2e_s[...] = jnp.zeros_like(n2e_s)
    pn_s[...] = jnp.zeros_like(pn_s)
    e2n_s[...] = jnp.zeros_like(e2n_s)

    # ---- gather node features onto edge rows (linear in E; no one-hot matmul) ----
    # rows 2e and 2e+1 are a pair, so each gathered row is also its pair's linmaps partner.
    def gather_body(r, carry):
        idx = ep_ref[r]
        row = node_ref[pl.ds(idx, 1), :]          # [1, Hp] f32 dynamic-sublane load
        n2e_s[pl.ds(r, 1), :] = row               # node2edge[r]
        pn_s[pl.ds(r ^ 1, 1), :] = row            # partner slot of the paired row
        return carry

    jax.lax.fori_loop(0, n_edge_rows, gather_body, 0, unroll=unroll)

    # ---- BN row-validity masks (padded rows excluded from batch statistics) ----
    emask = (jax.lax.broadcasted_iota(jnp.int32, (e2p, 1), 0) < n_edge_rows).astype(f32)
    nmask = (jax.lax.broadcasted_iota(jnp.int32, (npad, 1), 0) < n_node_rows).astype(f32)
    inv_e = 1.0 / float(n_edge_rows)
    inv_n = 1.0 / float(n_node_rows)

    edge_bf = edge_ref[...]                       # [2Ep, Hp] bf16
    n2e_bf = n2e_s[...].astype(bf16)
    pn_bf = pn_s[...].astype(bf16)

    # ---- edge MLP, layer 1 with split W1 (concat eliminated; W1s folded into W1n) ----
    h = (jnp.dot(edge_bf, e_w1e_ref[...], preferred_element_type=f32)
         + jnp.dot(n2e_bf, e_w1n_ref[...], preferred_element_type=f32)   # W1n' = W1n + W1s
         + jnp.dot(pn_bf, e_w1s_ref[...], preferred_element_type=f32))
    h = _bn_relu(h, e_g1_ref[...], e_b1_ref[...], emask, inv_e)
    y = jnp.dot(h.astype(bf16), e_w2_ref[...], preferred_element_type=f32)
    edge_out = _bn_relu(y, e_g2_ref[...], e_b2_ref[...], emask, inv_e)    # [2Ep, Hp] f32
    eo_s[...] = edge_out                                                  # f32 copy for scatter
    edge_out_ref[...] = edge_out.astype(edge_out_ref.dtype)               # bf16 writeback

    # ---- scatter-add edge rows back to nodes (linear in E; no one-hot matmul) ----
    def scatter_body(r, carry):
        idx = ep_ref[r]
        e2n_s[pl.ds(idx, 1), :] = e2n_s[pl.ds(idx, 1), :] + eo_s[pl.ds(r, 1), :]
        return carry

    jax.lax.fori_loop(0, n_edge_rows, scatter_body, 0, unroll=unroll)

    # ---- node MLP, layer 1 with split W1 (concat eliminated) ----
    node_bf = node_ref[...].astype(bf16)
    e2n_bf = e2n_s[...].astype(bf16)
    h2 = (jnp.dot(node_bf, n_w1a_ref[...], preferred_element_type=f32)
          + jnp.dot(e2n_bf, n_w1b_ref[...], preferred_element_type=f32))
    h2 = _bn_relu(h2, n_g1_ref[...], n_b1_ref[...], nmask, inv_n)
    y2 = jnp.dot(h2.astype(bf16), n_w2_ref[...], preferred_element_type=f32)
    node_out_ref[...] = _bn_relu(y2, n_g2_ref[...], n_b2_ref[...], nmask, inv_n).astype(
        node_out_ref.dtype)


# ----------------------------- parameters -----------------------------
def init_conv_layer_params(key, hidden_dim):
    """Logical (torch-shaped) params. Linear has no bias; BN defaults: weight=1, bias=0."""
    h = hidden_dim
    m = h * _INNER_MLP_MULT
    ks = jax.random.split(key, 4)

    def lin(k, fan_in, fan_out):
        bound = 1.0 / jnp.sqrt(fan_in)
        return jax.random.uniform(k, (fan_in, fan_out), jnp.float32, -bound, bound)

    return {
        # node_mlp: Linear(2H, 2H) -> BN -> ReLU -> Linear(2H, H) -> BN -> ReLU
        "node_w1": lin(ks[0], 2 * h, m),
        "node_g1": jnp.ones((1, m), jnp.float32),
        "node_b1": jnp.zeros((1, m), jnp.float32),
        "node_w2": lin(ks[1], m, h),
        "node_g2": jnp.ones((1, h), jnp.float32),
        "node_b2": jnp.zeros((1, h), jnp.float32),
        # edge_mlp: Linear(3H, 2H) -> BN -> ReLU -> Linear(2H, H) -> BN -> ReLU
        "edge_w1": lin(ks[2], 3 * h, m),
        "edge_g1": jnp.ones((1, m), jnp.float32),
        "edge_b1": jnp.zeros((1, m), jnp.float32),
        "edge_w2": lin(ks[3], m, h),
        "edge_g2": jnp.ones((1, h), jnp.float32),
        "edge_b2": jnp.zeros((1, h), jnp.float32),
    }


def pack_conv_layer_params(params, hidden_dim):
    """Split W1 per input block, fold the edge-sum block into the identity block,
    pad channels to 128 lanes, cast weights to bf16.  Call ONCE, outside the forward path."""
    h = hidden_dim
    m = h * _INNER_MLP_MULT
    hp = _round_up(h, _LANE)
    mp = _round_up(m, _LANE)

    def pad_w(w, rp, cp):
        return _pad2d(w, rp, cp).astype(jnp.bfloat16)

    def pad_v(v, cp):   # gamma/beta padded with 0 so padded channels stay exactly 0
        return _pad2d(v, 1, cp)

    ew1 = params["edge_w1"]   # [3H, M] -> blocks for [edge_rep | node2edge | edge_sum]
    nw1 = params["node_w1"]   # [2H, M] -> blocks for [node_rep | edge2node]
    return {
        "e_w1e": pad_w(ew1[:h], hp, mp),
        "e_w1n": pad_w(ew1[h:2 * h] + ew1[2 * h:], hp, mp),   # W1n' = W1n + W1s (fold)
        "e_w1s": pad_w(ew1[2 * h:], hp, mp),                  # applied to the partner rows
        "e_g1": pad_v(params["edge_g1"], mp), "e_b1": pad_v(params["edge_b1"], mp),
        "e_w2": pad_w(params["edge_w2"], mp, hp),
        "e_g2": pad_v(params["edge_g2"], hp), "e_b2": pad_v(params["edge_b2"], hp),
        "n_w1a": pad_w(nw1[:h], hp, mp),
        "n_w1b": pad_w(nw1[h:], hp, mp),
        "n_g1": pad_v(params["node_g1"], mp), "n_b1": pad_v(params["node_b1"], mp),
        "n_w2": pad_w(params["node_w2"], mp, hp),
        "n_g2": pad_v(params["node_g2"], hp), "n_b2": pad_v(params["node_b2"], hp),
    }


# ----------------------------- forward (Pallas) -----------------------------
def conv_layer_forward(packed, node_rep, edge_rep, endpoints):
    """ConvLayer.forward == Edge_node.forward; the whole layer runs in one Pallas kernel.

    packed:    output of pack_conv_layer_params (pre-padded bf16 weights; call once).
    endpoints: int32 [2E], node index of row r's reference atom (rows 2e, 2e+1 belong to
               edge e -- the linmaps partner pairing relies on this interleaving).
    Returns (node_out [N, H], edge_out [2E, H]) in bf16.
    """
    n_nodes = int(node_rep.shape[0])
    n2e_rows = int(endpoints.shape[0])           # 2E
    h = int(node_rep.shape[1])

    hp = _round_up(h, _LANE)
    e2p = _round_up(n2e_rows, _SUBLANE_BF16)
    npad = _round_up(n_nodes, _SUBLANE_BF16)

    # pad features; node table stays f32 (32-bit sublanes -> safe dynamic row gather),
    # edge table (only read contiguously) is bf16 to halve its DMA bytes.
    node_p = _pad2d(node_rep, npad, hp)
    edge_p = _pad2d(edge_rep, e2p, hp).astype(jnp.bfloat16)

    ep_pad = jnp.zeros((e2p,), jnp.int32).at[:n2e_rows].set(endpoints.astype(jnp.int32))

    smem = pl.BlockSpec(memory_space=pltpu.MemorySpace.SMEM)
    vmem = pl.BlockSpec(memory_space=pltpu.MemorySpace.VMEM)
    kernel = functools.partial(
        _conv_layer_kernel, n_edge_rows=n2e_rows, n_node_rows=n_nodes
    )
    edge_out_p, node_out_p = pl.pallas_call(
        kernel,
        out_shape=(
            jax.ShapeDtypeStruct((e2p, hp), jnp.bfloat16),
            jax.ShapeDtypeStruct((npad, hp), jnp.bfloat16),
        ),
        in_specs=[smem] + [vmem] * 17,
        out_specs=(vmem, vmem),
        scratch_shapes=[
            pltpu.VMEM((e2p, hp), jnp.float32),   # n2e_s  gathered node rows
            pltpu.VMEM((e2p, hp), jnp.float32),   # pn_s   linmaps partner rows
            pltpu.VMEM((e2p, hp), jnp.float32),   # eo_s   f32 edge_out for the scatter
            pltpu.VMEM((npad, hp), jnp.float32),  # e2n_s  scatter-add accumulator
        ],
        compiler_params=pltpu.CompilerParams(vmem_limit_bytes=32 * 1024 * 1024),
    )(
        ep_pad, node_p, edge_p,
        packed["e_w1e"], packed["e_w1n"], packed["e_w1s"], packed["e_g1"], packed["e_b1"],
        packed["e_w2"], packed["e_g2"], packed["e_b2"],
        packed["n_w1a"], packed["n_w1b"], packed["n_g1"], packed["n_b1"],
        packed["n_w2"], packed["n_g2"], packed["n_b2"],
    )
    return node_out_p[:n_nodes, :h], edge_out_p[:n2e_rows, :h]


# ----------------------------- pure-JAX reference (f32) -----------------------------
def _mlp_ref(x, w1, g1, b1, w2, g2, b2):
    h = x @ w1
    mu = h.mean(0, keepdims=True)
    var = ((h - mu) ** 2).mean(0, keepdims=True)
    h = jnp.maximum((h - mu) / jnp.sqrt(var + _BN_EPS) * g1 + b1, 0.0)
    y = h @ w2
    mu2 = y.mean(0, keepdims=True)
    var2 = ((y - mu2) ** 2).mean(0, keepdims=True)
    return jnp.maximum((y - mu2) / jnp.sqrt(var2 + _BN_EPS) * g2 + b2, 0.0)


def conv_layer_reference(params, node_rep, edge_rep, endpoints, num_nodes):
    n2e = node_rep[endpoints]
    partner = jnp.arange(endpoints.shape[0]) ^ 1
    esum = n2e + n2e[partner]
    edge_in = jnp.concatenate([edge_rep, n2e, esum], axis=-1)
    edge_out = _mlp_ref(edge_in, params["edge_w1"], params["edge_g1"], params["edge_b1"],
                        params["edge_w2"], params["edge_g2"], params["edge_b2"])
    e2n = jax.ops.segment_sum(edge_out, endpoints, num_segments=num_nodes)
    node_in = jnp.concatenate([node_rep, e2n], axis=-1)
    node_out = _mlp_ref(node_in, params["node_w1"], params["node_g1"], params["node_b1"],
                        params["node_w2"], params["node_g2"], params["node_b2"])
    return node_out, edge_out


# ----------------------------- main -----------------------------
if __name__ == "__main__":
    key = jax.random.PRNGKey(0)
    k_par, k_node, k_edge = jax.random.split(key, 3)

    hidden_dim = 32
    num_nodes = 8
    # small graph: ring of 8 nodes + 4 chords = 12 undirected edges
    edges = jnp.array(
        [[0, 1], [1, 2], [2, 3], [3, 4], [4, 5], [5, 6], [6, 7], [7, 0],
         [0, 4], [1, 5], [2, 6], [3, 7]],
        dtype=jnp.int32,
    )
    num_edges = edges.shape[0]
    endpoints = edges.reshape(-1)   # rows 2e, 2e+1 are the two reference atoms of edge e

    node_rep = jax.random.normal(k_node, (num_nodes, hidden_dim), jnp.float32)
    edge_rep = jax.random.normal(k_edge, (2 * num_edges, hidden_dim), jnp.float32)

    params = init_conv_layer_params(k_par, hidden_dim)
    packed = pack_conv_layer_params(params, hidden_dim)      # hoisted: pack/pad/cast ONCE

    fwd = jax.jit(conv_layer_forward)
    node_out, edge_out = fwd(packed, node_rep, edge_rep, endpoints)
    node_out = jax.block_until_ready(node_out)
    edge_out = jax.block_until_ready(edge_out)

    assert node_out.shape == (num_nodes, hidden_dim)
    assert edge_out.shape == (2 * num_edges, hidden_dim)
    assert bool(jnp.all(jnp.isfinite(node_out.astype(jnp.float32))))
    assert bool(jnp.all(jnp.isfinite(edge_out.astype(jnp.float32))))

    # loose-tolerance check vs. f32 reference (kernel uses bf16 MXU operands + bf16 outputs)
    node_ref, edge_ref_out = conv_layer_reference(params, node_rep, edge_rep, endpoints, num_nodes)
    assert bool(jnp.allclose(edge_out.astype(jnp.float32), edge_ref_out, rtol=1e-1, atol=1e-1))
    assert bool(jnp.allclose(node_out.astype(jnp.float32), node_ref, rtol=1e-1, atol=1e-1))

    print("KERNEL_OK")
</pallas_src>

<mosaic_0001>
module attributes {stable_mosaic.version = 11 : i64} {
  func.func @_conv_layer_kernel(%arg0: memref<32xi32, #tpu.memory_space<smem>>, %arg1: memref<16x128xf32, #tpu.memory_space<vmem>>, %arg2: memref<32x128xbf16, #tpu.memory_space<vmem>>, %arg3: memref<128x128xbf16, #tpu.memory_space<vmem>>, %arg4: memref<128x128xbf16, #tpu.memory_space<vmem>>, %arg5: memref<128x128xbf16, #tpu.memory_space<vmem>>, %arg6: memref<1x128xf32, #tpu.memory_space<vmem>>, %arg7: memref<1x128xf32, #tpu.memory_space<vmem>>, %arg8: memref<128x128xbf16, #tpu.memory_space<vmem>>, %arg9: memref<1x128xf32, #tpu.memory_space<vmem>>, %arg10: memref<1x128xf32, #tpu.memory_space<vmem>>, %arg11: memref<128x128xbf16, #tpu.memory_space<vmem>>, %arg12: memref<128x128xbf16, #tpu.memory_space<vmem>>, %arg13: memref<1x128xf32, #tpu.memory_space<vmem>>, %arg14: memref<1x128xf32, #tpu.memory_space<vmem>>, %arg15: memref<128x128xbf16, #tpu.memory_space<vmem>>, %arg16: memref<1x128xf32, #tpu.memory_space<vmem>>, %arg17: memref<1x128xf32, #tpu.memory_space<vmem>>, %arg18: memref<32x128xbf16, #tpu.memory_space<vmem>>, %arg19: memref<16x128xbf16, #tpu.memory_space<vmem>>, %arg20: memref<32x128xf32, #tpu.memory_space<vmem>>, %arg21: memref<32x128xf32, #tpu.memory_space<vmem>>, %arg22: memref<32x128xf32, #tpu.memory_space<vmem>>, %arg23: memref<16x128xf32, #tpu.memory_space<vmem>>) attributes {dimension_semantics = [], scalar_prefetch = 0 : i64, scratch_operands = 4 : i64, tpu.core_type = #tpu.core_type<tc>} {
    %cst = arith.constant 0.000000e+00 : f32
    %0 = vector.broadcast %cst : f32 to vector<32x128xf32>
    %c0 = arith.constant 0 : index
    %c0_0 = arith.constant 0 : index
    %1 = vector.load %arg20[%c0, %c0_0] : memref<32x128xf32, #tpu.memory_space<vmem>>, vector<32x128xf32>
    tpu.vector_store %arg20[%c0, %c0_0], %0 {strides = array<i32>} : memref<32x128xf32, #tpu.memory_space<vmem>>, vector<32x128xf32>,
    %cst_1 = arith.constant 0.000000e+00 : f32
    %2 = vector.broadcast %cst_1 : f32 to vector<32x128xf32>
    %c0_2 = arith.constant 0 : index
    %c0_3 = arith.constant 0 : index
    %3 = vector.load %arg21[%c0_2, %c0_3] : memref<32x128xf32, #tpu.memory_space<vmem>>, vector<32x128xf32>
    tpu.vector_store %arg21[%c0_2, %c0_3], %2 {strides = array<i32>} : memref<32x128xf32, #tpu.memory_space<vmem>>, vector<32x128xf32>,
    %cst_4 = arith.constant 0.000000e+00 : f32
    %4 = vector.broadcast %cst_4 : f32 to vector<16x128xf32>
    %c0_5 = arith.constant 0 : index
    %c0_6 = arith.constant 0 : index
    %5 = vector.load %arg23[%c0_5, %c0_6] : memref<16x128xf32, #tpu.memory_space<vmem>>, vector<16x128xf32>
    tpu.vector_store %arg23[%c0_5, %c0_6], %4 {strides = array<i32>} : memref<16x128xf32, #tpu.memory_space<vmem>>, vector<16x128xf32>,
    %c0_i32 = arith.constant 0 : i32
    %6 = arith.index_cast %c0_i32 : i32 to index
    %7 = memref.load %arg0[%6] : memref<32xi32, #tpu.memory_space<smem>>
    %8 = arith.index_cast %7 : i32 to index
    %c0_7 = arith.constant 0 : index
    %9 = vector.load %arg1[%8, %c0_7] : memref<16x128xf32, #tpu.memory_space<vmem>>, vector<1x128xf32>
    %10 = arith.index_cast %c0_i32 : i32 to index
    %c0_8 = arith.constant 0 : index
    %11 = vector.load %arg20[%10, %c0_8] : memref<32x128xf32, #tpu.memory_space<vmem>>, vector<1x128xf32>
    tpu.vector_store %arg20[%10, %c0_8], %9 {strides = array<i32>} : memref<32x128xf32, #tpu.memory_space<vmem>>, vector<1x128xf32>,
    %c1_i32 = arith.constant 1 : i32
    %12 = arith.xori %c0_i32, %c1_i32 : i32
    %13 = arith.index_cast %12 : i32 to index
    %c0_9 = arith.constant 0 : index
    %14 = vector.load %arg21[%13, %c0_9] : memref<32x128xf32, #tpu.memory_space<vmem>>, vector<1x128xf32>
    tpu.vector_store %arg21[%13, %c0_9], %9 {strides = array<i32>} : memref<32x128xf32, #tpu.memory_space<vmem>>, vector<1x128xf32>,
    %c1_i32_10 = arith.constant 1 : i32
    %15 = arith.index_cast %c1_i32_10 : i32 to index
    %16 = memref.load %arg0[%15] : memref<32xi32, #tpu.memory_space<smem>>
    %17 = arith.index_cast %16 : i32 to index
    %c0_11 = arith.constant 0 : index
    %18 = vector.load %arg1[%17, %c0_11] : memref<16x128xf32, #tpu.memory_space<vmem>>, vector<1x128xf32>
    %19 = arith.index_cast %c1_i32_10 : i32 to index
    %c0_12 = arith.constant 0 : index
    %20 = vector.load %arg20[%19, %c0_12] : memref<32x128xf32, #tpu.memory_space<vmem>>, vector<1x128xf32>
    tpu.vector_store %arg20[%19, %c0_12], %18 {strides = array<i32>} : memref<32x128xf32, #tpu.memory_space<vmem>>, vector<1x128xf32>,
    %c1_i32_13 = arith.constant 1 : i32
    %21 = arith.xori %c1_i32_10, %c1_i32_13 : i32
    %22 = arith.index_cast %21 : i32 to index
    %c0_14 = arith.constant 0 : index
    %23 = vector.load %arg21[%22, %c0_14] : memref<32x128xf32, #tpu.memory_space<vmem>>, vector<1x128xf32>
    tpu.vector_store %arg21[%22, %c0_14], %18 {strides = array<i32>} : memref<32x128xf32, #tpu.memory_space<vmem>>, vector<1x128xf32>,
    %c2_i32 = arith.constant 2 : i32
    %24 = arith.index_cast %c2_i32 : i32 to index
    %25 = memref.load %arg0[%24] : memref<32xi32, #tpu.memory_space<smem>>
    %26 = arith.index_cast %25 : i32 to index
    %c0_15 = arith.constant 0 : index
    %27 = vector.load %arg1[%26, %c0_15] : memref<16x128xf32, #tpu.memory_space<vmem>>, vector<1x128xf32>
    %28 = arith.index_cast %c2_i32 : i32 to index
    %c0_16 = arith.constant 0 : index
    %29 = vector.load %arg20[%28, %c0_16] : memref<32x128xf32, #tpu.memory_space<vmem>>, vector<1x128xf32>
    tpu.vector_store %arg20[%28, %c0_16], %27 {strides = array<i32>} : memref<32x128xf32, #tpu.memory_space<vmem>>, vector<1x128xf32>,
    %c1_i32_17 = arith.constant 1 : i32
    %30 = arith.xori %c2_i32, %c1_i32_17 : i32
    %31 = arith.index_cast %30 : i32 to index
    %c0_18 = arith.constant 0 : index
    %32 = vector.load %arg21[%31, %c0_18] : memref<32x128xf32, #tpu.memory_space<vmem>>, vector<1x128xf32>
    tpu.vector_store %arg21[%31, %c0_18], %27 {strides = array<i32>} : memref<32x128xf32, #tpu.memory_space<vmem>>, vector<1x128xf32>,
    %c3_i32 = arith.constant 3 : i32
    %33 = arith.index_cast %c3_i32 : i32 to index
    %34 = memref.load %arg0[%33] : memref<32xi32, #tpu.memory_space<smem>>
    %35 = arith.index_cast %34 : i32 to index
    %c0_19 = arith.constant 0 : index
    %36 = vector.load %arg1[%35, %c0_19] : memref<16x128xf32, #tpu.memory_space<vmem>>, vector<1x128xf32>
    %37 = arith.index_cast %c3_i32 : i32 to index
    %c0_20 = arith.constant 0 : index
    %38 = vector.load %arg20[%37, %c0_20] : memref<32x128xf32, #tpu.memory_space<vmem>>, vector<1x128xf32>
    tpu.vector_store %arg20[%37, %c0_20], %36 {strides = array<i32>} : memref<32x128xf32, #tpu.memory_space<vmem>>, vector<1x128xf32>,
    %c1_i32_21 = arith.constant 1 : i32
    %39 = arith.xori %c3_i32, %c1_i32_21 : i32
    %40 = arith.index_cast %39 : i32 to index
    %c0_22 = arith.constant 0 : index
    %41 = vector.load %arg21[%40, %c0_22] : memref<32x128xf32, #tpu.memory_space<vmem>>, vector<1x128xf32>
    tpu.vector_store %arg21[%40, %c0_22], %36 {strides = array<i32>} : memref<32x128xf32, #tpu.memory_space<vmem>>, vector<1x128xf32>,
    %c4_i32 = arith.constant 4 : i32
    %42 = arith.index_cast %c4_i32 : i32 to index
    %43 = memref.load %arg0[%42] : memref<32xi32, #tpu.memory_space<smem>>
    %44 = arith.index_cast %43 : i32 to index
    %c0_23 = arith.constant 0 : index
    %45 = vector.load %arg1[%44, %c0_23] : memref<16x128xf32, #tpu.memory_space<vmem>>, vector<1x128xf32>
    %46 = arith.index_cast %c4_i32 : i32 to index
    %c0_24 = arith.constant 0 : index
    %47 = vector.load %arg20[%46, %c0_24] : memref<32x128xf32, #tpu.memory_space<vmem>>, vector<1x128xf32>
    tpu.vector_store %arg20[%46, %c0_24], %45 {strides = array<i32>} : memref<32x128xf32, #tpu.memory_space<vmem>>, vector<1x128xf32>,
    %c1_i32_25 = arith.constant 1 : i32
    %48 = arith.xori %c4_i32, %c1_i32_25 : i32
    %49 = arith.index_cast %48 : i32 to index
    %c0_26 = arith.constant 0 : index
    %50 = vector.load %arg21[%49, %c0_26] : memref<32x128xf32, #tpu.memory_space<vmem>>, vector<1x128xf32>
    tpu.vector_store %arg21[%49, %c0_26], %45 {strides = array<i32>} : memref<32x128xf32, #tpu.memory_space<vmem>>, vector<1x128xf32>,
    %c5_i32 = arith.constant 5 : i32
    %51 = arith.index_cast %c5_i32 : i32 to index
    %52 = memref.load %arg0[%51] : memref<32xi32, #tpu.memory_space<smem>>
    %53 = arith.index_cast %52 : i32 to index
    %c0_27 = arith.constant 0 : index
    %54 = vector.load %arg1[%53, %c0_27] : memref<16x128xf32, #tpu.memory_space<vmem>>, vector<1x128xf32>
    %55 = arith.index_cast %c5_i32 : i32 to index
    %c0_28 = arith.constant 0 : index
    %56 = vector.load %arg20[%55, %c0_28] : memref<32x128xf32, #tpu.memory_space<vmem>>, vector<1x128xf32>
    tpu.vector_store %arg20[%55, %c0_28], %54 {strides = array<i32>} : memref<32x128xf32, #tpu.memory_space<vmem>>, vector<1x128xf32>,
    %c1_i32_29 = arith.constant 1 : i32
    %57 = arith.xori %c5_i32, %c1_i32_29 : i32
    %58 = arith.index_cast %57 : i32 to index
    %c0_30 = arith.constant 0 : index
    %59 = vector.load %arg21[%58, %c0_30] : memref<32x128xf32, #tpu.memory_space<vmem>>, vector<1x128xf32>
    tpu.vector_store %arg21[%58, %c0_30], %54 {strides = array<i32>} : memref<32x128xf32, #tpu.memory_space<vmem>>, vector<1x128xf32>,
    %c6_i32 = arith.constant 6 : i32
    %60 = arith.index_cast %c6_i32 : i32 to index
    %61 = memref.load %arg0[%60] : memref<32xi32, #tpu.memory_space<smem>>
    %62 = arith.index_cast %61 : i32 to index
    %c0_31 = arith.constant 0 : index
    %63 = vector.load %arg1[%62, %c0_31] : memref<16x128xf32, #tpu.memory_space<vmem>>, vector<1x128xf32>
    %64 = arith.index_cast %c6_i32 : i32 to index
    %c0_32 = arith.constant 0 : index
    %65 = vector.load %arg20[%64, %c0_32] : memref<32x128xf32, #tpu.memory_space<vmem>>, vector<1x128xf32>
    tpu.vector_store %arg20[%64, %c0_32], %63 {strides = array<i32>} : memref<32x128xf32, #tpu.memory_space<vmem>>, vector<1x128xf32>,
    %c1_i32_33 = arith.constant 1 : i32
    %66 = arith.xori %c6_i32, %c1_i32_33 : i32
    %67 = arith.index_cast %66 : i32 to index
    %c0_34 = arith.constant 0 : index
    %68 = vector.load %arg21[%67, %c0_34] : memref<32x128xf32, #tpu.memory_space<vmem>>, vector<1x128xf32>
    tpu.vector_store %arg21[%67, %c0_34], %63 {strides = array<i32>} : memref<32x128xf32, #tpu.memory_space<vmem>>, vector<1x128xf32>,
    %c7_i32 = arith.constant 7 : i32
    %69 = arith.index_cast %c7_i32 : i32 to index
    %70 = memref.load %arg0[%69] : memref<32xi32, #tpu.memory_space<smem>>
    %71 = arith.index_cast %70 : i32 to index
    %c0_35 = arith.constant 0 : index
    %72 = vector.load %arg1[%71, %c0_35] : memref<16x128xf32, #tpu.memory_space<vmem>>, vector<1x128xf32>
    %73 = arith.index_cast %c7_i32 : i32 to index
    %c0_36 = arith.constant 0 : index
    %74 = vector.load %arg20[%73, %c0_36] : memref<32x128xf32, #tpu.memory_space<vmem>>, vector<1x128xf32>
    tpu.vector_store %arg20[%73, %c0_36], %72 {strides = array<i32>} : memref<32x128xf32, #tpu.memory_space<vmem>>, vector<1x128xf32>,
    %c1_i32_37 = arith.constant 1 : i32
    %75 = arith.xori %c7_i32, %c1_i32_37 : i32
    %76 = arith.index_cast %75 : i32 to index
    %c0_38 = arith.constant 0 : index
    %77 = vector.load %arg21[%76, %c0_38] : memref<32x128xf32, #tpu.memory_space<vmem>>, vector<1x128xf32>
    tpu.vector_store %arg21[%76, %c0_38], %72 {strides = array<i32>} : memref<32x128xf32, #tpu.memory_space<vmem>>, vector<1x128xf32>,
    %c8_i32 = arith.constant 8 : i32
    %78 = arith.index_cast %c8_i32 : i32 to index
    %79 = memref.load %arg0[%78] : memref<32xi32, #tpu.memory_space<smem>>
    %80 = arith.index_cast %79 : i32 to index
    %c0_39 = arith.constant 0 : index
    %81 = vector.load %arg1[%80, %c0_39] : memref<16x128xf32, #tpu.memory_space<vmem>>, vector<1x128xf32>
    %82 = arith.index_cast %c8_i32 : i32 to index
    %c0_40 = arith.constant 0 : index
    %83 = vector.load %arg20[%82, %c0_40] : memref<32x128xf32, #tpu.memory_space<vmem>>, vector<1x128xf32>
    tpu.vector_store %arg20[%82, %c0_40], %81 {strides = array<i32>} : memref<32x128xf32, #tpu.memory_space<vmem>>, vector<1x128xf32>,
    %c1_i32_41 = arith.constant 1 : i32
    %84 = arith.xori %c8_i32, %c1_i32_41 : i32
    %85 = arith.index_cast %84 : i32 to index
    %c0_42 = arith.constant 0 : index
    %86 = vector.load %arg21[%85, %c0_42] : memref<32x128xf32, #tpu.memory_space<vmem>>, vector<1x128xf32>
    tpu.vector_store %arg21[%85, %c0_42], %81 {strides = array<i32>} : memref<32x128xf32, #tpu.memory_space<vmem>>, vector<1x128xf32>,
    %c9_i32 = arith.constant 9 : i32
    %87 = arith.index_cast %c9_i32 : i32 to index
    %88 = memref.load %arg0[%87] : memref<32xi32, #tpu.memory_space<smem>>
    %89 = arith.index_cast %88 : i32 to index
    %c0_43 = arith.constant 0 : index
    %90 = vector.load %arg1[%89, %c0_43] : memref<16x128xf32, #tpu.memory_space<vmem>>, vector<1x128xf32>
    %91 = arith.index_cast %c9_i32 : i32 to index
    %c0_44 = arith.constant 0 : index
    %92 = vector.load %arg20[%91, %c0_44] : memref<32x128xf32, #tpu.memory_space<vmem>>, vector<1x128xf32>
    tpu.vector_store %arg20[%91, %c0_44], %90 {strides = array<i32>} : memref<32x128xf32, #tpu.memory_space<vmem>>, vector<1x128xf32>,
    %c1_i32_45 = arith.constant 1 : i32
    %93 = arith.xori %c9_i32, %c1_i32_45 : i32
    %94 = arith.index_cast %93 : i32 to index
    %c0_46 = arith.constant 0 : index
    %95 = vector.load %arg21[%94, %c0_46] : memref<32x128xf32, #tpu.memory_space<vmem>>, vector<1x128xf32>
    tpu.vector_store %arg21[%94, %c0_46], %90 {strides = array<i32>} : memref<32x128xf32, #tpu.memory_space<vmem>>, vector<1x128xf32>,
    %c10_i32 = arith.constant 10 : i32
    %96 = arith.index_cast %c10_i32 : i32 to index
    %97 = memref.load %arg0[%96] : memref<32xi32, #tpu.memory_space<smem>>
    %98 = arith.index_cast %97 : i32 to index
    %c0_47 = arith.constant 0 : index
    %99 = vector.load %arg1[%98, %c0_47] : memref<16x128xf32, #tpu.memory_space<vmem>>, vector<1x128xf32>
    %100 = arith.index_cast %c10_i32 : i32 to index
    %c0_48 = arith.constant 0 : index
    %101 = vector.load %arg20[%100, %c0_48] : memref<32x128xf32, #tpu.memory_space<vmem>>, vector<1x128xf32>
    tpu.vector_store %arg20[%100, %c0_48], %99 {strides = array<i32>} : memref<32x128xf32, #tpu.memory_space<vmem>>, vector<1x128xf32>,
    %c1_i32_49 = arith.constant 1 : i32
    %102 = arith.xori %c10_i32, %c1_i32_49 : i32
    %103 = arith.index_cast %102 : i32 to index
    %c0_50 = arith.constant 0 : index
    %104 = vector.load %arg21[%103, %c0_50] : memref<32x128xf32, #tpu.memory_space<vmem>>, vector<1x128xf32>
    tpu.vector_store %arg21[%103, %c0_50], %99 {strides = array<i32>} : memref<32x128xf32, #tpu.memory_space<vmem>>, vector<1x128xf32>,
    %c11_i32 = arith.constant 11 : i32
    %105 = arith.index_cast %c11_i32 : i32 to index
    %106 = memref.load %arg0[%105] : memref<32xi32, #tpu.memory_space<smem>>
    %107 = arith.index_cast %106 : i32 to index
    %c0_51 = arith.constant 0 : index
    %108 = vector.load %arg1[%107, %c0_51] : memref<16x128xf32, #tpu.memory_space<vmem>>, vector<1x128xf32>
    %109 = arith.index_cast %c11_i32 : i32 to index
    %c0_52 = arith.constant 0 : index
    %110 = vector.load %arg20[%109, %c0_52] : memref<32x128xf32, #tpu.memory_space<vmem>>, vector<1x128xf32>
    tpu.vector_store %arg20[%109, %c0_52], %108 {strides = array<i32>} : memref<32x128xf32, #tpu.memory_space<vmem>>, vector<1x128xf32>,
    %c1_i32_53 = arith.constant 1 : i32
    %111 = arith.xori %c11_i32, %c1_i32_53 : i32
    %112 = arith.index_cast %111 : i32 to index
    %c0_54 = arith.constant 0 : index
    %113 = vector.load %arg21[%112, %c0_54] : memref<32x128xf32, #tpu.memory_space<vmem>>, vector<1x128xf32>
    tpu.vector_store %arg21[%112, %c0_54], %108 {strides = array<i32>} : memref<32x128xf32, #tpu.memory_space<vmem>>, vector<1x128xf32>,
    %c12_i32 = arith.constant 12 : i32
    %114 = arith.index_cast %c12_i32 : i32 to index
    %115 = memref.load %arg0[%114] : memref<32xi32, #tpu.memory_space<smem>>
    %116 = arith.index_cast %115 : i32 to index
    %c0_55 = arith.constant 0 : index
    %117 = vector.load %arg1[%116, %c0_55] : memref<16x128xf32, #tpu.memory_space<vmem>>, vector<1x128xf32>
    %118 = arith.index_cast %c12_i32 : i32 to index
    %c0_56 = arith.constant 0 : index
    %119 = vector.load %arg20[%118, %c0_56] : memref<32x128xf32, #tpu.memory_space<vmem>>, vector<1x128xf32>
    tpu.vector_store %arg20[%118, %c0_56], %117 {strides = array<i32>} : memref<32x128xf32, #tpu.memory_space<vmem>>, vector<1x128xf32>,
    %c1_i32_57 = arith.constant 1 : i32
    %120 = arith.xori %c12_i32, %c1_i32_57 : i32
    %121 = arith.index_cast %120 : i32 to index
    %c0_58 = arith.constant 0 : index
    %122 = vector.load %arg21[%121, %c0_58] : memref<32x128xf32, #tpu.memory_space<vmem>>, vector<1x128xf32>
    tpu.vector_store %arg21[%121, %c0_58], %117 {strides = array<i32>} : memref<32x128xf32, #tpu.memory_space<vmem>>, vector<1x128xf32>,
    %c13_i32 = arith.constant 13 : i32
    %123 = arith.index_cast %c13_i32 : i32 to index
    %124 = memref.load %arg0[%123] : memref<32xi32, #tpu.memory_space<smem>>
    %125 = arith.index_cast %124 : i32 to index
    %c0_59 = arith.constant 0 : index
    %126 = vector.load %arg1[%125, %c0_59] : memref<16x128xf32, #tpu.memory_space<vmem>>, vector<1x128xf32>
    %127 = arith.index_cast %c13_i32 : i32 to index
    %c0_60 = arith.constant 0 : index
    %128 = vector.load %arg20[%127, %c0_60] : memref<32x128xf32, #tpu.memory_space<vmem>>, vector<1x128xf32>
    tpu.vector_store %arg20[%127, %c0_60], %126 {strides = array<i32>} : memref<32x128xf32, #tpu.memory_space<vmem>>, vector<1x128xf32>,
    %c1_i32_61 = arith.constant 1 : i32
    %129 = arith.xori %c13_i32, %c1_i32_61 : i32
    %130 = arith.index_cast %129 : i32 to index
    %c0_62 = arith.constant 0 : index
    %131 = vector.load %arg21[%130, %c0_62] : memref<32x128xf32, #tpu.memory_space<vmem>>, vector<1x128xf32>
    tpu.vector_store %arg21[%130, %c0_62], %126 {strides = array<i32>} : memref<32x128xf32, #tpu.memory_space<vmem>>, vector<1x128xf32>,
    %c14_i32 = arith.constant 14 : i32
    %132 = arith.index_cast %c14_i32 : i32 to index
    %133 = memref.load %arg0[%132] : memref<32xi32, #tpu.memory_space<smem>>
    %134 = arith.index_cast %133 : i32 to index
    %c0_63 = arith.constant 0 : index
    %135 = vector.load %arg1[%134, %c0_63] : memref<16x128xf32, #tpu.memory_space<vmem>>, vector<1x128xf32>
    %136 = arith.index_cast %c14_i32 : i32 to index
    %c0_64 = arith.constant 0 : index
    %137 = vector.load %arg20[%136, %c0_64] : memref<32x128xf32, #tpu.memory_space<vmem>>, vector<1x128xf32>
    tpu.vector_store %arg20[%136, %c0_64], %135 {strides = array<i32>} : memref<32x128xf32, #tpu.memory_space<vmem>>, vector<1x128xf32>,
    %c1_i32_65 = arith.constant 1 : i32
    %138 = arith.xori %c14_i32, %c1_i32_65 : i32
    %139 = arith.index_cast %138 : i32 to index
    %c0_66 = arith.constant 0 : index
    %140 = vector.load %arg21[%139, %c0_66] : memref<32x128xf32, #tpu.memory_space<vmem>>, vector<1x128xf32>
    tpu.vector_store %arg21[%139, %c0_66], %135 {strides = array<i32>} : memref<32x128xf32, #tpu.memory_space<vmem>>, vector<1x128xf32>,
    %c15_i32 = arith.constant 15 : i32
    %141 = arith.index_cast %c15_i32 : i32 to index
    %142 = memref.load %arg0[%141] : memref<32xi32, #tpu.memory_space<smem>>
    %143 = arith.index_cast %142 : i32 to index
    %c0_67 = arith.constant 0 : index
    %144 = vector.load %arg1[%143, %c0_67] : memref<16x128xf32, #tpu.memory_space<vmem>>, vector<1x128xf32>
    %145 = arith.index_cast %c15_i32 : i32 to index
    %c0_68 = arith.constant 0 : index
    %146 = vector.load %arg20[%145, %c0_68] : memref<32x128xf32, #tpu.memory_space<vmem>>, vector<1x128xf32>
    tpu.vector_store %arg20[%145, %c0_68], %144 {strides = array<i32>} : memref<32x128xf32, #tpu.memory_space<vmem>>, vector<1x128xf32>,
    %c1_i32_69 = arith.constant 1 : i32
    %147 = arith.xori %c15_i32, %c1_i32_69 : i32
    %148 = arith.index_cast %147 : i32 to index
    %c0_70 = arith.constant 0 : index
    %149 = vector.load %arg21[%148, %c0_70] : memref<32x128xf32, #tpu.memory_space<vmem>>, vector<1x128xf32>
    tpu.vector_store %arg21[%148, %c0_70], %144 {strides = array<i32>} : memref<32x128xf32, #tpu.memory_space<vmem>>, vector<1x128xf32>,
    %c16_i32 = arith.constant 16 : i32
    %150 = arith.index_cast %c16_i32 : i32 to index
    %151 = memref.load %arg0[%150] : memref<32xi32, #tpu.memory_space<smem>>
    %152 = arith.index_cast %151 : i32 to index
    %c0_71 = arith.constant 0 : index
    %153 = vector.load %arg1[%152, %c0_71] : memref<16x128xf32, #tpu.memory_space<vmem>>, vector<1x128xf32>
    %154 = arith.index_cast %c16_i32 : i32 to index
    %c0_72 = arith.constant 0 : index
    %155 = vector.load %arg20[%154, %c0_72] : memref<32x128xf32, #tpu.memory_space<vmem>>, vector<1x128xf32>
    tpu.vector_store %arg20[%154, %c0_72], %153 {strides = array<i32>} : memref<32x128xf32, #tpu.memory_space<vmem>>, vector<1x128xf32>,
    %c1_i32_73 = arith.constant 1 : i32
    %156 = arith.xori %c16_i32, %c1_i32_73 : i32
    %157 = arith.index_cast %156 : i32 to index
    %c0_74 = arith.constant 0 : index
    %158 = vector.load %arg21[%157, %c0_74] : memref<32x128xf32, #tpu.memory_space<vmem>>, vector<1x128xf32>
    tpu.vector_store %arg21[%157, %c0_74], %153 {strides = array<i32>} : memref<32x128xf32, #tpu.memory_space<vmem>>, vector<1x128xf32>,
    %c17_i32 = arith.constant 17 : i32
    %159 = arith.index_cast %c17_i32 : i32 to index
    %160 = memref.load %arg0[%159] : memref<32xi32, #tpu.memory_space<smem>>
    %161 = arith.index_cast %160 : i32 to index
    %c0_75 = arith.constant 0 : index
    %162 = vector.load %arg1[%161, %c0_75] : memref<16x128xf32, #tpu.memory_space<vmem>>, vector<1x128xf32>
    %163 = arith.index_cast %c17_i32 : i32 to index
    %c0_76 = arith.constant 0 : index
    %164 = vector.load %arg20[%163, %c0_76] : memref<32x128xf32, #tpu.memory_space<vmem>>, vector<1x128xf32>
    tpu.vector_store %arg20[%163, %c0_76], %162 {strides = array<i32>} : memref<32x128xf32, #tpu.memory_space<vmem>>, vector<1x128xf32>,
    %c1_i32_77 = arith.constant 1 : i32
    %165 = arith.xori %c17_i32, %c1_i32_77 : i32
    %166 = arith.index_cast %165 : i32 to index
    %c0_78 = arith.constant 0 : index
    %167 = vector.load %arg21[%166, %c0_78] : memref<32x128xf32, #tpu.memory_space<vmem>>, vector<1x128xf32>
    tpu.vector_store %arg21[%166, %c0_78], %162 {strides = array<i32>} : memref<32x128xf32, #tpu.memory_space<vmem>>, vector<1x128xf32>,
    %c18_i32 = arith.constant 18 : i32
    %168 = arith.index_cast %c18_i32 : i32 to index
    %169 = memref.load %arg0[%168] : memref<32xi32, #tpu.memory_space<smem>>
    %170 = arith.index_cast %169 : i32 to index
    %c0_79 = arith.constant 0 : index
    %171 = vector.load %arg1[%170, %c0_79] : memref<16x128xf32, #tpu.memory_space<vmem>>, vector<1x128xf32>
    %172 = arith.index_cast %c18_i32 : i32 to index
    %c0_80 = arith.constant 0 : index
    %173 = vector.load %arg20[%172, %c0_80] : memref<32x128xf32, #tpu.memory_space<vmem>>, vector<1x128xf32>
    tpu.vector_store %arg20[%172, %c0_80], %171 {strides = array<i32>} : memref<32x128xf32, #tpu.memory_space<vmem>>, vector<1x128xf32>,
    %c1_i32_81 = arith.constant 1 : i32
    %174 = arith.xori %c18_i32, %c1_i32_81 : i32
    %175 = arith.index_cast %174 : i32 to index
    %c0_82 = arith.constant 0 : index
    %176 = vector.load %arg21[%175, %c0_82] : memref<32x128xf32, #tpu.memory_space<vmem>>, vector<1x128xf32>
    tpu.vector_store %arg21[%175, %c0_82], %171 {strides = array<i32>} : memref<32x128xf32, #tpu.memory_space<vmem>>, vector<1x128xf32>,
    %c19_i32 = arith.constant 19 : i32
    %177 = arith.index_cast %c19_i32 : i32 to index
    %178 = memref.load %arg0[%177] : memref<32xi32, #tpu.memory_space<smem>>
    %179 = arith.index_cast %178 : i32 to index
    %c0_83 = arith.constant 0 : index
    %180 = vector.load %arg1[%179, %c0_83] : memref<16x128xf32, #tpu.memory_space<vmem>>, vector<1x128xf32>
    %181 = arith.index_cast %c19_i32 : i32 to index
    %c0_84 = arith.constant 0 : index
    %182 = vector.load %arg20[%181, %c0_84] : memref<32x128xf32, #tpu.memory_space<vmem>>, vector<1x128xf32>
    tpu.vector_store %arg20[%181, %c0_84], %180 {strides = array<i32>} : memref<32x128xf32, #tpu.memory_space<vmem>>, vector<1x128xf32>,
    %c1_i32_85 = arith.constant 1 : i32
    %183 = arith.xori %c19_i32, %c1_i32_85 : i32
    %184 = arith.index_cast %183 : i32 to index
    %c0_86 = arith.constant 0 : index
    %185 = vector.load %arg21[%184, %c0_86] : memref<32x128xf32, #tpu.memory_space<vmem>>, vector<1x128xf32>
    tpu.vector_store %arg21[%184, %c0_86], %180 {strides = array<i32>} : memref<32x128xf32, #tpu.memory_space<vmem>>, vector<1x128xf32>,
    %c20_i32 = arith.constant 20 : i32
    %186 = arith.index_cast %c20_i32 : i32 to index
    %187 = memref.load %arg0[%186] : memref<32xi32, #tpu.memory_space<smem>>
    %188 = arith.index_cast %187 : i32 to index
    %c0_87 = arith.constant 0 : index
    %189 = vector.load %arg1[%188, %c0_87] : memref<16x128xf32, #tpu.memory_space<vmem>>, vector<1x128xf32>
    %190 = arith.index_cast %c20_i32 : i32 to index
    %c0_88 = arith.constant 0 : index
    %191 = vector.load %arg20[%190, %c0_88] : memref<32x128xf32, #tpu.memory_space<vmem>>, vector<1x128xf32>
    tpu.vector_store %arg20[%190, %c0_88], %189 {strides = array<i32>} : memref<32x128xf32, #tpu.memory_space<vmem>>, vector<1x128xf32>,
    %c1_i32_89 = arith.constant 1 : i32
    %192 = arith.xori %c20_i32, %c1_i32_89 : i32
    %193 = arith.index_cast %192 : i32 to index
    %c0_90 = arith.constant 0 : index
    %194 = vector.load %arg21[%193, %c0_90] : memref<32x128xf32, #tpu.memory_space<vmem>>, vector<1x128xf32>
    tpu.vector_store %arg21[%193, %c0_90], %189 {strides = array<i32>} : memref<32x128xf32, #tpu.memory_space<vmem>>, vector<1x128xf32>,
    %c21_i32 = arith.constant 21 : i32
    %195 = arith.index_cast %c21_i32 : i32 to index
    %196 = memref.load %arg0[%195] : memref<32xi32, #tpu.memory_space<smem>>
    %197 = arith.index_cast %196 : i32 to index
    %c0_91 = arith.constant 0 : index
    %198 = vector.load %arg1[%197, %c0_91] : memref<16x128xf32, #tpu.memory_space<vmem>>, vector<1x128xf32>
    %199 = arith.index_cast %c21_i32 : i32 to index
    %c0_92 = arith.constant 0 : index
    %200 = vector.load %arg20[%199, %c0_92] : memref<32x128xf32, #tpu.memory_space<vmem>>, vector<1x128xf32>
    tpu.vector_store %arg20[%199, %c0_92], %198 {strides = array<i32>} : memref<32x128xf32, #tpu.memory_space<vmem>>, vector<1x128xf32>,
    %c1_i32_93 = arith.constant 1 : i32
    %201 = arith.xori %c21_i32, %c1_i32_93 : i32
    %202 = arith.index_cast %201 : i32 to index
    %c0_94 = arith.constant 0 : index
    %203 = vector.load %arg21[%202, %c0_94] : memref<32x128xf32, #tpu.memory_space<vmem>>, vector<1x128xf32>
    tpu.vector_store %arg21[%202, %c0_94], %198 {strides = array<i32>} : memref<32x128xf32, #tpu.memory_space<vmem>>, vector<1x128xf32>,
    %c22_i32 = arith.constant 22 : i32
    %204 = arith.index_cast %c22_i32 : i32 to index
    %205 = memref.load %arg0[%204] : memref<32xi32, #tpu.memory_space<smem>>
    %206 = arith.index_cast %205 : i32 to index
    %c0_95 = arith.constant 0 : index
    %207 = vector.load %arg1[%206, %c0_95] : memref<16x128xf32, #tpu.memory_space<vmem>>, vector<1x128xf32>
    %208 = arith.index_cast %c22_i32 : i32 to index
    %c0_96 = arith.constant 0 : index
    %209 = vector.load %arg20[%208, %c0_96] : memref<32x128xf32, #tpu.memory_space<vmem>>, vector<1x128xf32>
    tpu.vector_store %arg20[%208, %c0_96], %207 {strides = array<i32>} : memref<32x128xf32, #tpu.memory_space<vmem>>, vector<1x128xf32>,
    %c1_i32_97 = arith.constant 1 : i32
    %210 = arith.xori %c22_i32, %c1_i32_97 : i32
    %211 = arith.index_cast %210 : i32 to index
    %c0_98 = arith.constant 0 : index
    %212 = vector.load %arg21[%211, %c0_98] : memref<32x128xf32, #tpu.memory_space<vmem>>, vector<1x128xf32>
    tpu.vector_store %arg21[%211, %c0_98], %207 {strides = array<i32>} : memref<32x128xf32, #tpu.memory_space<vmem>>, vector<1x128xf32>,
    %c23_i32 = arith.constant 23 : i32
    %213 = arith.index_cast %c23_i32 : i32 to index
    %214 = memref.load %arg0[%213] : memref<32xi32, #tpu.memory_space<smem>>
    %215 = arith.index_cast %214 : i32 to index
    %c0_99 = arith.constant 0 : index
    %216 = vector.load %arg1[%215, %c0_99] : memref<16x128xf32, #tpu.memory_space<vmem>>, vector<1x128xf32>
    %217 = arith.index_cast %c23_i32 : i32 to index
    %c0_100 = arith.constant 0 : index
    %218 = vector.load %arg20[%217, %c0_100] : memref<32x128xf32, #tpu.memory_space<vmem>>, vector<1x128xf32>
    tpu.vector_store %arg20[%217, %c0_100], %216 {strides = array<i32>} : memref<32x128xf32, #tpu.memory_space<vmem>>, vector<1x128xf32>,
    %c1_i32_101 = arith.constant 1 : i32
    %219 = arith.xori %c23_i32, %c1_i32_101 : i32
    %220 = arith.index_cast %219 : i32 to index
    %c0_102 = arith.constant 0 : index
    %221 = vector.load %arg21[%220, %c0_102] : memref<32x128xf32, #tpu.memory_space<vmem>>, vector<1x128xf32>
    tpu.vector_store %arg21[%220, %c0_102], %216 {strides = array<i32>} : memref<32x128xf32, #tpu.memory_space<vmem>>, vector<1x128xf32>,
    %c24_i32 = arith.constant 24 : i32
    %222 = tpu.iota {dimensions = array<i32: 0>} : vector<32x1xi32>
    %c24_i32_103 = arith.constant 24 : i32
    %223 = vector.broadcast %c24_i32_103 : i32 to vector<32x1xi32>
    %224 = arith.cmpi slt, %222, %223 : vector<32x1xi32>
    %225 = arith.extui %224 : vector<32x1xi1> to vector<32x1xi32>
    %226 = arith.sitofp %225 : vector<32x1xi32> to vector<32x1xf32>
    %227 = tpu.iota {dimensions = array<i32: 0>} : vector<16x1xi32>
    %c8_i32_104 = arith.constant 8 : i32
    %228 = vector.broadcast %c8_i32_104 : i32 to vector<16x1xi32>
    %229 = arith.cmpi slt, %227, %228 : vector<16x1xi32>
    %230 = arith.extui %229 : vector<16x1xi1> to vector<16x1xi32>
    %231 = arith.sitofp %230 : vector<16x1xi32> to vector<16x1xf32>
    %c0_105 = arith.constant 0 : index
    %c0_106 = arith.constant 0 : index
    %232 = vector.load %arg2[%c0_105, %c0_106] : memref<32x128xbf16, #tpu.memory_space<vmem>>, vector<32x128xbf16>
    %c0_107 = arith.constant 0 : index
    %c0_108 = arith.constant 0 : index
    %233 = vector.load %arg20[%c0_107, %c0_108] : memref<32x128xf32, #tpu.memory_space<vmem>>, vector<32x128xf32>
    %234 = arith.truncf %233 : vector<32x128xf32> to vector<32x128xbf16>
    %c0_109 = arith.constant 0 : index
    %c0_110 = arith.constant 0 : index
    %235 = vector.load %arg21[%c0_109, %c0_110] : memref<32x128xf32, #tpu.memory_space<vmem>>, vector<32x128xf32>
    %236 = arith.truncf %235 : vector<32x128xf32> to vector<32x128xbf16>
    %c0_111 = arith.constant 0 : index
    %c0_112 = arith.constant 0 : index
    %237 = vector.load %arg3[%c0_111, %c0_112] : memref<128x128xbf16, #tpu.memory_space<vmem>>, vector<128x128xbf16>
    %cst_113 = arith.constant dense<0.000000e+00> : vector<32x128xf32>
    %238 = tpu.matmul %232, %237, %cst_113 {dimension_numbers = #tpu.dot_dimension_numbers<[1], [0], [0], [1], [0, 0, 1, 1], [], []>} : vector<32x128xbf16>, vector<128x128xbf16>, vector<32x128xf32> -> vector<32x128xf32>
    %c0_114 = arith.constant 0 : index
    %c0_115 = arith.constant 0 : index
    %239 = vector.load %arg4[%c0_114, %c0_115] : memref<128x128xbf16, #tpu.memory_space<vmem>>, vector<128x128xbf16>
    %cst_116 = arith.constant dense<0.000000e+00> : vector<32x128xf32>
    %240 = tpu.matmul %234, %239, %cst_116 {dimension_numbers = #tpu.dot_dimension_numbers<[1], [0], [0], [1], [0, 0, 1, 1], [], []>} : vector<32x128xbf16>, vector<128x128xbf16>, vector<32x128xf32> -> vector<32x128xf32>
    %241 = arith.addf %238, %240 : vector<32x128xf32>
    %c0_117 = arith.constant 0 : index
    %c0_118 = arith.constant 0 : index
    %242 = vector.load %arg5[%c0_117, %c0_118] : memref<128x128xbf16, #tpu.memory_space<vmem>>, vector<128x128xbf16>
    %cst_119 = arith.constant dense<0.000000e+00> : vector<32x128xf32>
    %243 = tpu.matmul %236, %242, %cst_119 {dimension_numbers = #tpu.dot_dimension_numbers<[1], [0], [0], [1], [0, 0, 1, 1], [], []>} : vector<32x128xbf16>, vector<128x128xbf16>, vector<32x128xf32> -> vector<32x128xf32>
    %244 = arith.addf %241, %243 : vector<32x128xf32>
    %c0_120 = arith.constant 0 : index
    %c0_121 = arith.constant 0 : index
    %245 = vector.load %arg6[%c0_120, %c0_121] : memref<1x128xf32, #tpu.memory_space<vmem>>, vector<1x128xf32>
    %c0_122 = arith.constant 0 : index
    %c0_123 = arith.constant 0 : index
    %246 = vector.load %arg7[%c0_122, %c0_123] : memref<1x128xf32, #tpu.memory_space<vmem>>, vector<1x128xf32>
    %247 = vector.broadcast %226 : vector<32x1xf32> to vector<32x128xf32>
    %248 = arith.mulf %244, %247 : vector<32x128xf32>
    %cst_124 = arith.constant dense<0.000000e+00> : vector<128xf32>
    %249 = vector.multi_reduction <add>, %248, %cst_124 [0] : vector<32x128xf32> to vector<128xf32>
    %250 = vector.shape_cast %249 : vector<128xf32> to vector<1x128xf32>
    %cst_125 = arith.constant 0.0416666679 : f32
    %251 = vector.broadcast %cst_125 : f32 to vector<1x128xf32>
    %252 = arith.mulf %250, %251 : vector<1x128xf32>
    %253 = vector.broadcast %252 : vector<1x128xf32> to vector<32x128xf32>
    %254 = arith.subf %244, %253 : vector<32x128xf32>
    %255 = arith.mulf %254, %254 : vector<32x128xf32>
    %256 = vector.broadcast %226 : vector<32x1xf32> to vector<32x128xf32>
    %257 = arith.mulf %255, %256 : vector<32x128xf32>
    %cst_126 = arith.constant dense<0.000000e+00> : vector<128xf32>
    %258 = vector.multi_reduction <add>, %257, %cst_126 [0] : vector<32x128xf32> to vector<128xf32>
    %259 = vector.shape_cast %258 : vector<128xf32> to vector<1x128xf32>
    %cst_127 = arith.constant 0.0416666679 : f32
    %260 = vector.broadcast %cst_127 : f32 to vector<1x128xf32>
    %261 = arith.mulf %259, %260 : vector<1x128xf32>
    %cst_128 = arith.constant 9.99999974E-6 : f32
    %262 = vector.broadcast %cst_128 : f32 to vector<1x128xf32>
    %263 = arith.addf %261, %262 : vector<1x128xf32>
    %264 = math.rsqrt %263 : vector<1x128xf32>
    %265 = vector.broadcast %264 : vector<1x128xf32> to vector<32x128xf32>
    %266 = arith.mulf %254, %265 : vector<32x128xf32>
    %267 = vector.broadcast %245 : vector<1x128xf32> to vector<32x128xf32>
    %268 = arith.mulf %266, %267 : vector<32x128xf32>
    %269 = vector.broadcast %246 : vector<1x128xf32> to vector<32x128xf32>
    %270 = arith.addf %268, %269 : vector<32x128xf32>
    %cst_129 = arith.constant 0.000000e+00 : f32
    %271 = vector.broadcast %cst_129 : f32 to vector<32x128xf32>
    %272 = arith.maximumf %270, %271 : vector<32x128xf32>
    %273 = arith.truncf %272 : vector<32x128xf32> to vector<32x128xbf16>
    %c0_130 = arith.constant 0 : index
    %c0_131 = arith.constant 0 : index
    %274 = vector.load %arg8[%c0_130, %c0_131] : memref<128x128xbf16, #tpu.memory_space<vmem>>, vector<128x128xbf16>
    %cst_132 = arith.constant dense<0.000000e+00> : vector<32x128xf32>
    %275 = tpu.matmul %273, %274, %cst_132 {dimension_numbers = #tpu.dot_dimension_numbers<[1], [0], [0], [1], [0, 0, 1, 1], [], []>} : vector<32x128xbf16>, vector<128x128xbf16>, vector<32x128xf32> -> vector<32x128xf32>
    %c0_133 = arith.constant 0 : index
    %c0_134 = arith.constant 0 : index
    %276 = vector.load %arg9[%c0_133, %c0_134] : memref<1x128xf32, #tpu.memory_space<vmem>>, vector<1x128xf32>
    %c0_135 = arith.constant 0 : index
    %c0_136 = arith.constant 0 : index
    %277 = vector.load %arg10[%c0_135, %c0_136] : memref<1x128xf32, #tpu.memory_space<vmem>>, vector<1x128xf32>
    %278 = vector.broadcast %226 : vector<32x1xf32> to vector<32x128xf32>
    %279 = arith.mulf %275, %278 : vector<32x128xf32>
    %cst_137 = arith.constant dense<0.000000e+00> : vector<128xf32>
    %280 = vector.multi_reduction <add>, %279, %cst_137 [0] : vector<32x128xf32> to vector<128xf32>
    %281 = vector.shape_cast %280 : vector<128xf32> to vector<1x128xf32>
    %cst_138 = arith.constant 0.0416666679 : f32
    %282 = vector.broadcast %cst_138 : f32 to vector<1x128xf32>
    %283 = arith.mulf %281, %282 : vector<1x128xf32>
    %284 = vector.broadcast %283 : vector<1x128xf32> to vector<32x128xf32>
    %285 = arith.subf %275, %284 : vector<32x128xf32>
    %286 = arith.mulf %285, %285 : vector<32x128xf32>
    %287 = vector.broadcast %226 : vector<32x1xf32> to vector<32x128xf32>
    %288 = arith.mulf %286, %287 : vector<32x128xf32>
    %cst_139 = arith.constant dense<0.000000e+00> : vector<128xf32>
    %289 = vector.multi_reduction <add>, %288, %cst_139 [0] : vector<32x128xf32> to vector<128xf32>
    %290 = vector.shape_cast %289 : vector<128xf32> to vector<1x128xf32>
    %cst_140 = arith.constant 0.0416666679 : f32
    %291 = vector.broadcast %cst_140 : f32 to vector<1x128xf32>
    %292 = arith.mulf %290, %291 : vector<1x128xf32>
    %cst_141 = arith.constant 9.99999974E-6 : f32
    %293 = vector.broadcast %cst_141 : f32 to vector<1x128xf32>
    %294 = arith.addf %292, %293 : vector<1x128xf32>
    %295 = math.rsqrt %294 : vector<1x128xf32>
    %296 = vector.broadcast %295 : vector<1x128xf32> to vector<32x128xf32>
    %297 = arith.mulf %285, %296 : vector<32x128xf32>
    %298 = vector.broadcast %276 : vector<1x128xf32> to vector<32x128xf32>
    %299 = arith.mulf %297, %298 : vector<32x128xf32>
    %300 = vector.broadcast %277 : vector<1x128xf32> to vector<32x128xf32>
    %301 = arith.addf %299, %300 : vector<32x128xf32>
    %cst_142 = arith.constant 0.000000e+00 : f32
    %302 = vector.broadcast %cst_142 : f32 to vector<32x128xf32>
    %303 = arith.maximumf %301, %302 : vector<32x128xf32>
    %c0_143 = arith.constant 0 : index
    %c0_144 = arith.constant 0 : index
    %304 = vector.load %arg22[%c0_143, %c0_144] : memref<32x128xf32, #tpu.memory_space<vmem>>, vector<32x128xf32>
    tpu.vector_store %arg22[%c0_143, %c0_144], %303 {strides = array<i32>} : memref<32x128xf32, #tpu.memory_space<vmem>>, vector<32x128xf32>,
    %305 = arith.truncf %303 : vector<32x128xf32> to vector<32x128xbf16>
    %c0_145 = arith.constant 0 : index
    %c0_146 = arith.constant 0 : index
    %306 = vector.load %arg18[%c0_145, %c0_146] : memref<32x128xbf16, #tpu.memory_space<vmem>>, vector<32x128xbf16>
    tpu.vector_store %arg18[%c0_145, %c0_146], %305 {strides = array<i32>} : memref<32x128xbf16, #tpu.memory_space<vmem>>, vector<32x128xbf16>,
    %c0_i32_147 = arith.constant 0 : i32
    %307 = arith.index_cast %c0_i32_147 : i32 to index
    %308 = memref.load %arg0[%307] : memref<32xi32, #tpu.memory_space<smem>>
    %309 = arith.index_cast %308 : i32 to index
    %c0_148 = arith.constant 0 : index
    %310 = vector.load %arg23[%309, %c0_148] : memref<16x128xf32, #tpu.memory_space<vmem>>, vector<1x128xf32>
    %311 = arith.index_cast %c0_i32_147 : i32 to index
    %c0_149 = arith.constant 0 : index
    %312 = vector.load %arg22[%311, %c0_149] : memref<32x128xf32, #tpu.memory_space<vmem>>, vector<1x128xf32>
    %313 = arith.addf %310, %312 : vector<1x128xf32>
    %314 = arith.index_cast %308 : i32 to index
    %c0_150 = arith.constant 0 : index
    %315 = vector.load %arg23[%314, %c0_150] : memref<16x128xf32, #tpu.memory_space<vmem>>, vector<1x128xf32>
    tpu.vector_store %arg23[%314, %c0_150], %313 {strides = array<i32>} : memref<16x128xf32, #tpu.memory_space<vmem>>, vector<1x128xf32>,
    %c1_i32_151 = arith.constant 1 : i32
    %316 = arith.index_cast %c1_i32_151 : i32 to index
    %317 = memref.load %arg0[%316] : memref<32xi32, #tpu.memory_space<smem>>
    %318 = arith.index_cast %317 : i32 to index
    %c0_152 = arith.constant 0 : index
    %319 = vector.load %arg23[%318, %c0_152] : memref<16x128xf32, #tpu.memory_space<vmem>>, vector<1x128xf32>
    %320 = arith.index_cast %c1_i32_151 : i32 to index
    %c0_153 = arith.constant 0 : index
    %321 = vector.load %arg22[%320, %c0_153] : memref<32x128xf32, #tpu.memory_space<vmem>>, vector<1x128xf32>
    %322 = arith.addf %319, %321 : vector<1x128xf32>
    %323 = arith.index_cast %317 : i32 to index
    %c0_154 = arith.constant 0 : index
    %324 = vector.load %arg23[%323, %c0_154] : memref<16x128xf32, #tpu.memory_space<vmem>>, vector<1x128xf32>
    tpu.vector_store %arg23[%323, %c0_154], %322 {strides = array<i32>} : memref<16x128xf32, #tpu.memory_space<vmem>>, vector<1x128xf32>,
    %c2_i32_155 = arith.constant 2 : i32
    %325 = arith.index_cast %c2_i32_155 : i32 to index
    %326 = memref.load %arg0[%325] : memref<32xi32, #tpu.memory_space<smem>>
    %327 = arith.index_cast %326 : i32 to index
    %c0_156 = arith.constant 0 : index
    %328 = vector.load %arg23[%327, %c0_156] : memref<16x128xf32, #tpu.memory_space<vmem>>, vector<1x128xf32>
    %329 = arith.index_cast %c2_i32_155 : i32 to index
    %c0_157 = arith.constant 0 : index
    %330 = vector.load %arg22[%329, %c0_157] : memref<32x128xf32, #tpu.memory_space<vmem>>, vector<1x128xf32>
    %331 = arith.addf %328, %330 : vector<1x128xf32>
    %332 = arith.index_cast %326 : i32 to index
    %c0_158 = arith.constant 0 : index
    %333 = vector.load %arg23[%332, %c0_158] : memref<16x128xf32, #tpu.memory_space<vmem>>, vector<1x128xf32>
    tpu.vector_store %arg23[%332, %c0_158], %331 {strides = array<i32>} : memref<16x128xf32, #tpu.memory_space<vmem>>, vector<1x128xf32>,
    %c3_i32_159 = arith.constant 3 : i32
    %334 = arith.index_cast %c3_i32_159 : i32 to index
    %335 = memref.load %arg0[%334] : memref<32xi32, #tpu.memory_space<smem>>
    %336 = arith.index_cast %335 : i32 to index
    %c0_160 = arith.constant 0 : index
    %337 = vector.load %arg23[%336, %c0_160] : memref<16x128xf32, #tpu.memory_space<vmem>>, vector<1x128xf32>
    %338 = arith.index_cast %c3_i32_159 : i32 to index
    %c0_161 = arith.constant 0 : index
    %339 = vector.load %arg22[%338, %c0_161] : memref<32x128xf32, #tpu.memory_space<vmem>>, vector<1x128xf32>
    %340 = arith.addf %337, %339 : vector<1x128xf32>
    %341 = arith.index_cast %335 : i32 to index
    %c0_162 = arith.constant 0 : index
    %342 = vector.load %arg23[%341, %c0_162] : memref<16x128xf32, #tpu.memory_space<vmem>>, vector<1x128xf32>
    tpu.vector_store %arg23[%341, %c0_162], %340 {strides = array<i32>} : memref<16x128xf32, #tpu.memory_space<vmem>>, vector<1x128xf32>,
    %c4_i32_163 = arith.constant 4 : i32
    %343 = arith.index_cast %c4_i32_163 : i32 to index
    %344 = memref.load %arg0[%343] : memref<32xi32, #tpu.memory_space<smem>>
    %345 = arith.index_cast %344 : i32 to index
    %c0_164 = arith.constant 0 : index
    %346 = vector.load %arg23[%345, %c0_164] : memref<16x128xf32, #tpu.memory_space<vmem>>, vector<1x128xf32>
    %347 = arith.index_cast %c4_i32_163 : i32 to index
    %c0_165 = arith.constant 0 : index
    %348 = vector.load %arg22[%347, %c0_165] : memref<32x128xf32, #tpu.memory_space<vmem>>, vector<1x128xf32>
    %349 = arith.addf %346, %348 : vector<1x128xf32>
    %350 = arith.index_cast %344 : i32 to index
    %c0_166 = arith.constant 0 : index
    %351 = vector.load %arg23[%350, %c0_166] : memref<16x128xf32, #tpu.memory_space<vmem>>, vector<1x128xf32>
    tpu.vector_store %arg23[%350, %c0_166], %349 {strides = array<i32>} : memref<16x128xf32, #tpu.memory_space<vmem>>, vector<1x128xf32>,
    %c5_i32_167 = arith.constant 5 : i32
    %352 = arith.index_cast %c5_i32_167 : i32 to index
    %353 = memref.load %arg0[%352] : memref<32xi32, #tpu.memory_space<smem>>
    %354 = arith.index_cast %353 : i32 to index
    %c0_168 = arith.constant 0 : index
    %355 = vector.load %arg23[%354, %c0_168] : memref<16x128xf32, #tpu.memory_space<vmem>>, vector<1x128xf32>
    %356 = arith.index_cast %c5_i32_167 : i32 to index
    %c0_169 = arith.constant 0 : index
    %357 = vector.load %arg22[%356, %c0_169] : memref<32x128xf32, #tpu.memory_space<vmem>>, vector<1x128xf32>
    %358 = arith.addf %355, %357 : vector<1x128xf32>
    %359 = arith.index_cast %353 : i32 to index
    %c0_170 = arith.constant 0 : index
    %360 = vector.load %arg23[%359, %c0_170] : memref<16x128xf32, #tpu.memory_space<vmem>>, vector<1x128xf32>
    tpu.vector_store %arg23[%359, %c0_170], %358 {strides = array<i32>} : memref<16x128xf32, #tpu.memory_space<vmem>>, vector<1x128xf32>,
    %c6_i32_171 = arith.constant 6 : i32
    %361 = arith.index_cast %c6_i32_171 : i32 to index
    %362 = memref.load %arg0[%361] : memref<32xi32, #tpu.memory_space<smem>>
    %363 = arith.index_cast %362 : i32 to index
    %c0_172 = arith.constant 0 : index
    %364 = vector.load %arg23[%363, %c0_172] : memref<16x128xf32, #tpu.memory_space<vmem>>, vector<1x128xf32>
    %365 = arith.index_cast %c6_i32_171 : i32 to index
    %c0_173 = arith.constant 0 : index
    %366 = vector.load %arg22[%365, %c0_173] : memref<32x128xf32, #tpu.memory_space<vmem>>, vector<1x128xf32>
    %367 = arith.addf %364, %366 : vector<1x128xf32>
    %368 = arith.index_cast %362 : i32 to index
    %c0_174 = arith.constant 0 : index
    %369 = vector.load %arg23[%368, %c0_174] : memref<16x128xf32, #tpu.memory_space<vmem>>, vector<1x128xf32>
    tpu.vector_store %arg23[%368, %c0_174], %367 {strides = array<i32>} : memref<16x128xf32, #tpu.memory_space<vmem>>, vector<1x128xf32>,
    %c7_i32_175 = arith.constant 7 : i32
    %370 = arith.index_cast %c7_i32_175 : i32 to index
    %371 = memref.load %arg0[%370] : memref<32xi32, #tpu.memory_space<smem>>
    %372 = arith.index_cast %371 : i32 to index
    %c0_176 = arith.constant 0 : index
    %373 = vector.load %arg23[%372, %c0_176] : memref<16x128xf32, #tpu.memory_space<vmem>>, vector<1x128xf32>
    %374 = arith.index_cast %c7_i32_175 : i32 to index
    %c0_177 = arith.constant 0 : index
    %375 = vector.load %arg22[%374, %c0_177] : memref<32x128xf32, #tpu.memory_space<vmem>>, vector<1x128xf32>
    %376 = arith.addf %373, %375 : vector<1x128xf32>
    %377 = arith.index_cast %371 : i32 to index
    %c0_178 = arith.constant 0 : index
    %378 = vector.load %arg23[%377, %c0_178] : memref<16x128xf32, #tpu.memory_space<vmem>>, vector<1x128xf32>
    tpu.vector_store %arg23[%377, %c0_178], %376 {strides = array<i32>} : memref<16x128xf32, #tpu.memory_space<vmem>>, vector<1x128xf32>,
    %c8_i32_179 = arith.constant 8 : i32
    %379 = arith.index_cast %c8_i32_179 : i32 to index
    %380 = memref.load %arg0[%379] : memref<32xi32, #tpu.memory_space<smem>>
    %381 = arith.index_cast %380 : i32 to index
    %c0_180 = arith.constant 0 : index
    %382 = vector.load %arg23[%381, %c0_180] : memref<16x128xf32, #tpu.memory_space<vmem>>, vector<1x128xf32>
    %383 = arith.index_cast %c8_i32_179 : i32 to index
    %c0_181 = arith.constant 0 : index
    %384 = vector.load %arg22[%383, %c0_181] : memref<32x128xf32, #tpu.memory_space<vmem>>, vector<1x128xf32>
    %385 = arith.addf %382, %384 : vector<1x128xf32>
    %386 = arith.index_cast %380 : i32 to index
    %c0_182 = arith.constant 0 : index
    %387 = vector.load %arg23[%386, %c0_182] : memref<16x128xf32, #tpu.memory_space<vmem>>, vector<1x128xf32>
    tpu.vector_store %arg23[%386, %c0_182], %385 {strides = array<i32>} : memref<16x128xf32, #tpu.memory_space<vmem>>, vector<1x128xf32>,
    %c9_i32_183 = arith.constant 9 : i32
    %388 = arith.index_cast %c9_i32_183 : i32 to index
    %389 = memref.load %arg0[%388] : memref<32xi32, #tpu.memory_space<smem>>
    %390 = arith.index_cast %389 : i32 to index
    %c0_184 = arith.constant 0 : index
    %391 = vector.load %arg23[%390, %c0_184] : memref<16x128xf32, #tpu.memory_space<vmem>>, vector<1x128xf32>
    %392 = arith.index_cast %c9_i32_183 : i32 to index
    %c0_185 = arith.constant 0 : index
    %393 = vector.load %arg22[%392, %c0_185] : memref<32x128xf32, #tpu.memory_space<vmem>>, vector<1x128xf32>
    %394 = arith.addf %391, %393 : vector<1x128xf32>
    %395 = arith.index_cast %389 : i32 to index
    %c0_186 = arith.constant 0 : index
    %396 = vector.load %arg23[%395, %c0_186] : memref<16x128xf32, #tpu.memory_space<vmem>>, vector<1x128xf32>
    tpu.vector_store %arg23[%395, %c0_186], %394 {strides = array<i32>} : memref<16x128xf32, #tpu.memory_space<vmem>>, vector<1x128xf32>,
    %c10_i32_187 = arith.constant 10 : i32
    %397 = arith.index_cast %c10_i32_187 : i32 to index
    %398 = memref.load %arg0[%397] : memref<32xi32, #tpu.memory_space<smem>>
    %399 = arith.index_cast %398 : i32 to index
    %c0_188 = arith.constant 0 : index
    %400 = vector.load %arg23[%399, %c0_188] : memref<16x128xf32, #tpu.memory_space<vmem>>, vector<1x128xf32>
    %401 = arith.index_cast %c10_i32_187 : i32 to index
    %c0_189 = arith.constant 0 : index
    %402 = vector.load %arg22[%401, %c0_189] : memref<32x128xf32, #tpu.memory_space<vmem>>, vector<1x128xf32>
    %403 = arith.addf %400, %402 : vector<1x128xf32>
    %404 = arith.index_cast %398 : i32 to index
    %c0_190 = arith.constant 0 : index
    %405 = vector.load %arg23[%404, %c0_190] : memref<16x128xf32, #tpu.memory_space<vmem>>, vector<1x128xf32>
    tpu.vector_store %arg23[%404, %c0_190], %403 {strides = array<i32>} : memref<16x128xf32, #tpu.memory_space<vmem>>, vector<1x128xf32>,
    %c11_i32_191 = arith.constant 11 : i32
    %406 = arith.index_cast %c11_i32_191 : i32 to index
    %407 = memref.load %arg0[%406] : memref<32xi32, #tpu.memory_space<smem>>
    %408 = arith.index_cast %407 : i32 to index
    %c0_192 = arith.constant 0 : index
    %409 = vector.load %arg23[%408, %c0_192] : memref<16x128xf32, #tpu.memory_space<vmem>>, vector<1x128xf32>
    %410 = arith.index_cast %c11_i32_191 : i32 to index
    %c0_193 = arith.constant 0 : index
    %411 = vector.load %arg22[%410, %c0_193] : memref<32x128xf32, #tpu.memory_space<vmem>>, vector<1x128xf32>
    %412 = arith.addf %409, %411 : vector<1x128xf32>
    %413 = arith.index_cast %407 : i32 to index
    %c0_194 = arith.constant 0 : index
    %414 = vector.load %arg23[%413, %c0_194] : memref<16x128xf32, #tpu.memory_space<vmem>>, vector<1x128xf32>
    tpu.vector_store %arg23[%413, %c0_194], %412 {strides = array<i32>} : memref<16x128xf32, #tpu.memory_space<vmem>>, vector<1x128xf32>,
    %c12_i32_195 = arith.constant 12 : i32
    %415 = arith.index_cast %c12_i32_195 : i32 to index
    %416 = memref.load %arg0[%415] : memref<32xi32, #tpu.memory_space<smem>>
    %417 = arith.index_cast %416 : i32 to index
    %c0_196 = arith.constant 0 : index
    %418 = vector.load %arg23[%417, %c0_196] : memref<16x128xf32, #tpu.memory_space<vmem>>, vector<1x128xf32>
    %419 = arith.index_cast %c12_i32_195 : i32 to index
    %c0_197 = arith.constant 0 : index
    %420 = vector.load %arg22[%419, %c0_197] : memref<32x128xf32, #tpu.memory_space<vmem>>, vector<1x128xf32>
    %421 = arith.addf %418, %420 : vector<1x128xf32>
    %422 = arith.index_cast %416 : i32 to index
    %c0_198 = arith.constant 0 : index
    %423 = vector.load %arg23[%422, %c0_198] : memref<16x128xf32, #tpu.memory_space<vmem>>, vector<1x128xf32>
    tpu.vector_store %arg23[%422, %c0_198], %421 {strides = array<i32>} : memref<16x128xf32, #tpu.memory_space<vmem>>, vector<1x128xf32>,
    %c13_i32_199 = arith.constant 13 : i32
    %424 = arith.index_cast %c13_i32_199 : i32 to index
    %425 = memref.load %arg0[%424] : memref<32xi32, #tpu.memory_space<smem>>
    %426 = arith.index_cast %425 : i32 to index
    %c0_200 = arith.constant 0 : index
    %427 = vector.load %arg23[%426, %c0_200] : memref<16x128xf32, #tpu.memory_space<vmem>>, vector<1x128xf32>
    %428 = arith.index_cast %c13_i32_199 : i32 to index
    %c0_201 = arith.constant 0 : index
    %429 = vector.load %arg22[%428, %c0_201] : memref<32x128xf32, #tpu.memory_space<vmem>>, vector<1x128xf32>
    %430 = arith.addf %427, %429 : vector<1x128xf32>
    %431 = arith.index_cast %425 : i32 to index
    %c0_202 = arith.constant 0 : index
    %432 = vector.load %arg23[%431, %c0_202] : memref<16x128xf32, #tpu.memory_space<vmem>>, vector<1x128xf32>
    tpu.vector_store %arg23[%431, %c0_202], %430 {strides = array<i32>} : memref<16x128xf32, #tpu.memory_space<vmem>>, vector<1x128xf32>,
    %c14_i32_203 = arith.constant 14 : i32
    %433 = arith.index_cast %c14_i32_203 : i32 to index
    %434 = memref.load %arg0[%433] : memref<32xi32, #tpu.memory_space<smem>>
    %435 = arith.index_cast %434 : i32 to index
    %c0_204 = arith.constant 0 : index
    %436 = vector.load %arg23[%435, %c0_204] : memref<16x128xf32, #tpu.memory_space<vmem>>, vector<1x128xf32>
    %437 = arith.index_cast %c14_i32_203 : i32 to index
    %c0_205 = arith.constant 0 : index
    %438 = vector.load %arg22[%437, %c0_205] : memref<32x128xf32, #tpu.memory_space<vmem>>, vector<1x128xf32>
    %439 = arith.addf %436, %438 : vector<1x128xf32>
    %440 = arith.index_cast %434 : i32 to index
    %c0_206 = arith.constant 0 : index
    %441 = vector.load %arg23[%440, %c0_206] : memref<16x128xf32, #tpu.memory_space<vmem>>, vector<1x128xf32>
    tpu.vector_store %arg23[%440, %c0_206], %439 {strides = array<i32>} : memref<16x128xf32, #tpu.memory_space<vmem>>, vector<1x128xf32>,
    %c15_i32_207 = arith.constant 15 : i32
    %442 = arith.index_cast %c15_i32_207 : i32 to index
    %443 = memref.load %arg0[%442] : memref<32xi32, #tpu.memory_space<smem>>
    %444 = arith.index_cast %443 : i32 to index
    %c0_208 = arith.constant 0 : index
    %445 = vector.load %arg23[%444, %c0_208] : memref<16x128xf32, #tpu.memory_space<vmem>>, vector<1x128xf32>
    %446 = arith.index_cast %c15_i32_207 : i32 to index
    %c0_209 = arith.constant 0 : index
    %447 = vector.load %arg22[%446, %c0_209] : memref<32x128xf32, #tpu.memory_space<vmem>>, vector<1x128xf32>
    %448 = arith.addf %445, %447 : vector<1x128xf32>
    %449 = arith.index_cast %443 : i32 to index
    %c0_210 = arith.constant 0 : index
    %450 = vector.load %arg23[%449, %c0_210] : memref<16x128xf32, #tpu.memory_space<vmem>>, vector<1x128xf32>
    tpu.vector_store %arg23[%449, %c0_210], %448 {strides = array<i32>} : memref<16x128xf32, #tpu.memory_space<vmem>>, vector<1x128xf32>,
    %c16_i32_211 = arith.constant 16 : i32
    %451 = arith.index_cast %c16_i32_211 : i32 to index
    %452 = memref.load %arg0[%451] : memref<32xi32, #tpu.memory_space<smem>>
    %453 = arith.index_cast %452 : i32 to index
    %c0_212 = arith.constant 0 : index
    %454 = vector.load %arg23[%453, %c0_212] : memref<16x128xf32, #tpu.memory_space<vmem>>, vector<1x128xf32>
    %455 = arith.index_cast %c16_i32_211 : i32 to index
    %c0_213 = arith.constant 0 : index
    %456 = vector.load %arg22[%455, %c0_213] : memref<32x128xf32, #tpu.memory_space<vmem>>, vector<1x128xf32>
    %457 = arith.addf %454, %456 : vector<1x128xf32>
    %458 = arith.index_cast %452 : i32 to index
    %c0_214 = arith.constant 0 : index
    %459 = vector.load %arg23[%458, %c0_214] : memref<16x128xf32, #tpu.memory_space<vmem>>, vector<1x128xf32>
    tpu.vector_store %arg23[%458, %c0_214], %457 {strides = array<i32>} : memref<16x128xf32, #tpu.memory_space<vmem>>, vector<1x128xf32>,
    %c17_i32_215 = arith.constant 17 : i32
    %460 = arith.index_cast %c17_i32_215 : i32 to index
    %461 = memref.load %arg0[%460] : memref<32xi32, #tpu.memory_space<smem>>
    %462 = arith.index_cast %461 : i32 to index
    %c0_216 = arith.constant 0 : index
    %463 = vector.load %arg23[%462, %c0_216] : memref<16x128xf32, #tpu.memory_space<vmem>>, vector<1x128xf32>
    %464 = arith.index_cast %c17_i32_215 : i32 to index
    %c0_217 = arith.constant 0 : index
    %465 = vector.load %arg22[%464, %c0_217] : memref<32x128xf32, #tpu.memory_space<vmem>>, vector<1x128xf32>
    %466 = arith.addf %463, %465 : vector<1x128xf32>
    %467 = arith.index_cast %461 : i32 to index
    %c0_218 = arith.constant 0 : index
    %468 = vector.load %arg23[%467, %c0_218] : memref<16x128xf32, #tpu.memory_space<vmem>>, vector<1x128xf32>
    tpu.vector_store %arg23[%467, %c0_218], %466 {strides = array<i32>} : memref<16x128xf32, #tpu.memory_space<vmem>>, vector<1x128xf32>,
    %c18_i32_219 = arith.constant 18 : i32
    %469 = arith.index_cast %c18_i32_219 : i32 to index
    %470 = memref.load %arg0[%469] : memref<32xi32, #tpu.memory_space<smem>>
    %471 = arith.index_cast %470 : i32 to index
    %c0_220 = arith.constant 0 : index
    %472 = vector.load %arg23[%471, %c0_220] : memref<16x128xf32, #tpu.memory_space<vmem>>, vector<1x128xf32>
    %473 = arith.index_cast %c18_i32_219 : i32 to index
    %c0_221 = arith.constant 0 : index
    %474 = vector.load %arg22[%473, %c0_221] : memref<32x128xf32, #tpu.memory_space<vmem>>, vector<1x128xf32>
    %475 = arith.addf %472, %474 : vector<1x128xf32>
    %476 = arith.index_cast %470 : i32 to index
    %c0_222 = arith.constant 0 : index
    %477 = vector.load %arg23[%476, %c0_222] : memref<16x128xf32, #tpu.memory_space<vmem>>, vector<1x128xf32>
    tpu.vector_store %arg23[%476, %c0_222], %475 {strides = array<i32>} : memref<16x128xf32, #tpu.memory_space<vmem>>, vector<1x128xf32>,
    %c19_i32_223 = arith.constant 19 : i32
    %478 = arith.index_cast %c19_i32_223 : i32 to index
    %479 = memref.load %arg0[%478] : memref<32xi32, #tpu.memory_space<smem>>
    %480 = arith.index_cast %479 : i32 to index
    %c0_224 = arith.constant 0 : index
    %481 = vector.load %arg23[%480, %c0_224] : memref<16x128xf32, #tpu.memory_space<vmem>>, vector<1x128xf32>
    %482 = arith.index_cast %c19_i32_223 : i32 to index
    %c0_225 = arith.constant 0 : index
    %483 = vector.load %arg22[%482, %c0_225] : memref<32x128xf32, #tpu.memory_space<vmem>>, vector<1x128xf32>
    %484 = arith.addf %481, %483 : vector<1x128xf32>
    %485 = arith.index_cast %479 : i32 to index
    %c0_226 = arith.constant 0 : index
    %486 = vector.load %arg23[%485, %c0_226] : memref<16x128xf32, #tpu.memory_space<vmem>>, vector<1x128xf32>
    tpu.vector_store %arg23[%485, %c0_226], %484 {strides = array<i32>} : memref<16x128xf32, #tpu.memory_space<vmem>>, vector<1x128xf32>,
    %c20_i32_227 = arith.constant 20 : i32
    %487 = arith.index_cast %c20_i32_227 : i32 to index
    %488 = memref.load %arg0[%487] : memref<32xi32, #tpu.memory_space<smem>>
    %489 = arith.index_cast %488 : i32 to index
    %c0_228 = arith.constant 0 : index
    %490 = vector.load %arg23[%489, %c0_228] : memref<16x128xf32, #tpu.memory_space<vmem>>, vector<1x128xf32>
    %491 = arith.index_cast %c20_i32_227 : i32 to index
    %c0_229 = arith.constant 0 : index
    %492 = vector.load %arg22[%491, %c0_229] : memref<32x128xf32, #tpu.memory_space<vmem>>, vector<1x128xf32>
    %493 = arith.addf %490, %492 : vector<1x128xf32>
    %494 = arith.index_cast %488 : i32 to index
    %c0_230 = arith.constant 0 : index
    %495 = vector.load %arg23[%494, %c0_230] : memref<16x128xf32, #tpu.memory_space<vmem>>, vector<1x128xf32>
    tpu.vector_store %arg23[%494, %c0_230], %493 {strides = array<i32>} : memref<16x128xf32, #tpu.memory_space<vmem>>, vector<1x128xf32>,
    %c21_i32_231 = arith.constant 21 : i32
    %496 = arith.index_cast %c21_i32_231 : i32 to index
    %497 = memref.load %arg0[%496] : memref<32xi32, #tpu.memory_space<smem>>
    %498 = arith.index_cast %497 : i32 to index
    %c0_232 = arith.constant 0 : index
    %499 = vector.load %arg23[%498, %c0_232] : memref<16x128xf32, #tpu.memory_space<vmem>>, vector<1x128xf32>
    %500 = arith.index_cast %c21_i32_231 : i32 to index
    %c0_233 = arith.constant 0 : index
    %501 = vector.load %arg22[%500, %c0_233] : memref<32x128xf32, #tpu.memory_space<vmem>>, vector<1x128xf32>
    %502 = arith.addf %499, %501 : vector<1x128xf32>
    %503 = arith.index_cast %497 : i32 to index
    %c0_234 = arith.constant 0 : index
    %504 = vector.load %arg23[%503, %c0_234] : memref<16x128xf32, #tpu.memory_space<vmem>>, vector<1x128xf32>
    tpu.vector_store %arg23[%503, %c0_234], %502 {strides = array<i32>} : memref<16x128xf32, #tpu.memory_space<vmem>>, vector<1x128xf32>,
    %c22_i32_235 = arith.constant 22 : i32
    %505 = arith.index_cast %c22_i32_235 : i32 to index
    %506 = memref.load %arg0[%505] : memref<32xi32, #tpu.memory_space<smem>>
    %507 = arith.index_cast %506 : i32 to index
    %c0_236 = arith.constant 0 : index
    %508 = vector.load %arg23[%507, %c0_236] : memref<16x128xf32, #tpu.memory_space<vmem>>, vector<1x128xf32>
    %509 = arith.index_cast %c22_i32_235 : i32 to index
    %c0_237 = arith.constant 0 : index
    %510 = vector.load %arg22[%509, %c0_237] : memref<32x128xf32, #tpu.memory_space<vmem>>, vector<1x128xf32>
    %511 = arith.addf %508, %510 : vector<1x128xf32>
    %512 = arith.index_cast %506 : i32 to index
    %c0_238 = arith.constant 0 : index
    %513 = vector.load %arg23[%512, %c0_238] : memref<16x128xf32, #tpu.memory_space<vmem>>, vector<1x128xf32>
    tpu.vector_store %arg23[%512, %c0_238], %511 {strides = array<i32>} : memref<16x128xf32, #tpu.memory_space<vmem>>, vector<1x128xf32>,
    %c23_i32_239 = arith.constant 23 : i32
    %514 = arith.index_cast %c23_i32_239 : i32 to index
    %515 = memref.load %arg0[%514] : memref<32xi32, #tpu.memory_space<smem>>
    %516 = arith.index_cast %515 : i32 to index
    %c0_240 = arith.constant 0 : index
    %517 = vector.load %arg23[%516, %c0_240] : memref<16x128xf32, #tpu.memory_space<vmem>>, vector<1x128xf32>
    %518 = arith.index_cast %c23_i32_239 : i32 to index
    %c0_241 = arith.constant 0 : index
    %519 = vector.load %arg22[%518, %c0_241] : memref<32x128xf32, #tpu.memory_space<vmem>>, vector<1x128xf32>
    %520 = arith.addf %517, %519 : vector<1x128xf32>
    %521 = arith.index_cast %515 : i32 to index
    %c0_242 = arith.constant 0 : index
    %522 = vector.load %arg23[%521, %c0_242] : memref<16x128xf32, #tpu.memory_space<vmem>>, vector<1x128xf32>
    tpu.vector_store %arg23[%521, %c0_242], %520 {strides = array<i32>} : memref<16x128xf32, #tpu.memory_space<vmem>>, vector<1x128xf32>,
    %c24_i32_243 = arith.constant 24 : i32
    %c0_244 = arith.constant 0 : index
    %c0_245 = arith.constant 0 : index
    %523 = vector.load %arg1[%c0_244, %c0_245] : memref<16x128xf32, #tpu.memory_space<vmem>>, vector<16x128xf32>
    %524 = arith.truncf %523 : vector<16x128xf32> to vector<16x128xbf16>
    %c0_246 = arith.constant 0 : index
    %c0_247 = arith.constant 0 : index
    %525 = vector.load %arg23[%c0_246, %c0_247] : memref<16x128xf32, #tpu.memory_space<vmem>>, vector<16x128xf32>
    %526 = arith.truncf %525 : vector<16x128xf32> to vector<16x128xbf16>
    %c0_248 = arith.constant 0 : index
    %c0_249 = arith.constant 0 : index
    %527 = vector.load %arg11[%c0_248, %c0_249] : memref<128x128xbf16, #tpu.memory_space<vmem>>, vector<128x128xbf16>
    %cst_250 = arith.constant dense<0.000000e+00> : vector<16x128xf32>
    %528 = tpu.matmul %524, %527, %cst_250 {dimension_numbers = #tpu.dot_dimension_numbers<[1], [0], [0], [1], [0, 0, 1, 1], [], []>} : vector<16x128xbf16>, vector<128x128xbf16>, vector<16x128xf32> -> vector<16x128xf32>
    %c0_251 = arith.constant 0 : index
    %c0_252 = arith.constant 0 : index
    %529 = vector.load %arg12[%c0_251, %c0_252] : memref<128x128xbf16, #tpu.memory_space<vmem>>, vector<128x128xbf16>
    %cst_253 = arith.constant dense<0.000000e+00> : vector<16x128xf32>
    %530 = tpu.matmul %526, %529, %cst_253 {dimension_numbers = #tpu.dot_dimension_numbers<[1], [0], [0], [1], [0, 0, 1, 1], [], []>} : vector<16x128xbf16>, vector<128x128xbf16>, vector<16x128xf32> -> vector<16x128xf32>
    %531 = arith.addf %528, %530 : vector<16x128xf32>
    %c0_254 = arith.constant 0 : index
    %c0_255 = arith.constant 0 : index
    %532 = vector.load %arg13[%c0_254, %c0_255] : memref<1x128xf32, #tpu.memory_space<vmem>>, vector<1x128xf32>
    %c0_256 = arith.constant 0 : index
    %c0_257 = arith.constant 0 : index
    %533 = vector.load %arg14[%c0_256, %c0_257] : memref<1x128xf32, #tpu.memory_space<vmem>>, vector<1x128xf32>
    %534 = vector.broadcast %231 : vector<16x1xf32> to vector<16x128xf32>
    %535 = arith.mulf %531, %534 : vector<16x128xf32>
    %cst_258 = arith.constant dense<0.000000e+00> : vector<128xf32>
    %536 = vector.multi_reduction <add>, %535, %cst_258 [0] : vector<16x128xf32> to vector<128xf32>
    %537 = vector.shape_cast %536 : vector<128xf32> to vector<1x128xf32>
    %cst_259 = arith.constant 1.250000e-01 : f32
    %538 = vector.broadcast %cst_259 : f32 to vector<1x128xf32>
    %539 = arith.mulf %537, %538 : vector<1x128xf32>
    %540 = vector.broadcast %539 : vector<1x128xf32> to vector<16x128xf32>
    %541 = arith.subf %531, %540 : vector<16x128xf32>
    %542 = arith.mulf %541, %541 : vector<16x128xf32>
    %543 = vector.broadcast %231 : vector<16x1xf32> to vector<16x128xf32>
    %544 = arith.mulf %542, %543 : vector<16x128xf32>
    %cst_260 = arith.constant dense<0.000000e+00> : vector<128xf32>
    %545 = vector.multi_reduction <add>, %544, %cst_260 [0] : vector<16x128xf32> to vector<128xf32>
    %546 = vector.shape_cast %545 : vector<128xf32> to vector<1x128xf32>
    %cst_261 = arith.constant 1.250000e-01 : f32
    %547 = vector.broadcast %cst_261 : f32 to vector<1x128xf32>
    %548 = arith.mulf %546, %547 : vector<1x128xf32>
    %cst_262 = arith.constant 9.99999974E-6 : f32
    %549 = vector.broadcast %cst_262 : f32 to vector<1x128xf32>
    %550 = arith.addf %548, %549 : vector<1x128xf32>
    %551 = math.rsqrt %550 : vector<1x128xf32>
    %552 = vector.broadcast %551 : vector<1x128xf32> to vector<16x128xf32>
    %553 = arith.mulf %541, %552 : vector<16x128xf32>
    %554 = vector.broadcast %532 : vector<1x128xf32> to vector<16x128xf32>
    %555 = arith.mulf %553, %554 : vector<16x128xf32>
    %556 = vector.broadcast %533 : vector<1x128xf32> to vector<16x128xf32>
    %557 = arith.addf %555, %556 : vector<16x128xf32>
    %cst_263 = arith.constant 0.000000e+00 : f32
    %558 = vector.broadcast %cst_263 : f32 to vector<16x128xf32>
    %559 = arith.maximumf %557, %558 : vector<16x128xf32>
    %560 = arith.truncf %559 : vector<16x128xf32> to vector<16x128xbf16>
    %c0_264 = arith.constant 0 : index
    %c0_265 = arith.constant 0 : index
    %561 = vector.load %arg15[%c0_264, %c0_265] : memref<128x128xbf16, #tpu.memory_space<vmem>>, vector<128x128xbf16>
    %cst_266 = arith.constant dense<0.000000e+00> : vector<16x128xf32>
    %562 = tpu.matmul %560, %561, %cst_266 {dimension_numbers = #tpu.dot_dimension_numbers<[1], [0], [0], [1], [0, 0, 1, 1], [], []>} : vector<16x128xbf16>, vector<128x128xbf16>, vector<16x128xf32> -> vector<16x128xf32>
    %c0_267 = arith.constant 0 : index
    %c0_268 = arith.constant 0 : index
    %563 = vector.load %arg16[%c0_267, %c0_268] : memref<1x128xf32, #tpu.memory_space<vmem>>, vector<1x128xf32>
    %c0_269 = arith.constant 0 : index
    %c0_270 = arith.constant 0 : index
    %564 = vector.load %arg17[%c0_269, %c0_270] : memref<1x128xf32, #tpu.memory_space<vmem>>, vector<1x128xf32>
    %565 = vector.broadcast %231 : vector<16x1xf32> to vector<16x128xf32>
    %566 = arith.mulf %562, %565 : vector<16x128xf32>
    %cst_271 = arith.constant dense<0.000000e+00> : vector<128xf32>
    %567 = vector.multi_reduction <add>, %566, %cst_271 [0] : vector<16x128xf32> to vector<128xf32>
    %568 = vector.shape_cast %567 : vector<128xf32> to vector<1x128xf32>
    %cst_272 = arith.constant 1.250000e-01 : f32
    %569 = vector.broadcast %cst_272 : f32 to vector<1x128xf32>
    %570 = arith.mulf %568, %569 : vector<1x128xf32>
    %571 = vector.broadcast %570 : vector<1x128xf32> to vector<16x128xf32>
    %572 = arith.subf %562, %571 : vector<16x128xf32>
    %573 = arith.mulf %572, %572 : vector<16x128xf32>
    %574 = vector.broadcast %231 : vector<16x1xf32> to vector<16x128xf32>
    %575 = arith.mulf %573, %574 : vector<16x128xf32>
    %cst_273 = arith.constant dense<0.000000e+00> : vector<128xf32>
    %576 = vector.multi_reduction <add>, %575, %cst_273 [0] : vector<16x128xf32> to vector<128xf32>
    %577 = vector.shape_cast %576 : vector<128xf32> to vector<1x128xf32>
    %cst_274 = arith.constant 1.250000e-01 : f32
    %578 = vector.broadcast %cst_274 : f32 to vector<1x128xf32>
    %579 = arith.mulf %577, %578 : vector<1x128xf32>
    %cst_275 = arith.constant 9.99999974E-6 : f32
    %580 = vector.broadcast %cst_275 : f32 to vector<1x128xf32>
    %581 = arith.addf %579, %580 : vector<1x128xf32>
    %582 = math.rsqrt %581 : vector<1x128xf32>
    %583 = vector.broadcast %582 : vector<1x128xf32> to vector<16x128xf32>
    %584 = arith.mulf %572, %583 : vector<16x128xf32>
    %585 = vector.broadcast %563 : vector<1x128xf32> to vector<16x128xf32>
    %586 = arith.mulf %584, %585 : vector<16x128xf32>
    %587 = vector.broadcast %564 : vector<1x128xf32> to vector<16x128xf32>
    %588 = arith.addf %586, %587 : vector<16x128xf32>
    %cst_276 = arith.constant 0.000000e+00 : f32
    %589 = vector.broadcast %cst_276 : f32 to vector<16x128xf32>
    %590 = arith.maximumf %588, %589 : vector<16x128xf32>
    %591 = arith.truncf %590 : vector<16x128xf32> to vector<16x128xbf16>
    %c0_277 = arith.constant 0 : index
    %c0_278 = arith.constant 0 : index
    %592 = vector.load %arg19[%c0_277, %c0_278] : memref<16x128xbf16, #tpu.memory_space<vmem>>, vector<16x128xbf16>
    tpu.vector_store %arg19[%c0_277, %c0_278], %591 {strides = array<i32>} : memref<16x128xbf16, #tpu.memory_space<vmem>>, vector<16x128xbf16>,
    return
  }
}

</mosaic_0001>

<bundles_post_ra>
// kernel: conv_layer_forward.1
= control target key start
LH: loop header
LB: loop body
LE: loop exit
PB: predicated region body
PF: predicated region fallthrough
CT: control target
= control target key end

     0   :  { %s2590_s0 = inlined_call_operand.vmem [shape: s32[32], index: 0, kind: input, shape index: {}]   ;;  %s2591_s1 = inlined_call_operand.vmem [shape: f32[16,128], index: 1, kind: input, shape index: {}]   ;;  %s2592_s2 = inlined_call_operand.vmem [shape: bf16[32,128], index: 2, kind: input, shape index: {}]   ;;  %s2593_s3 = inlined_call_operand.vmem [shape: bf16[128,128], index: 3, kind: input, shape index: {}]   ;;  %s2594_s4 = inlined_call_operand.hbm [shape: bf16[128,128], index: 4, kind: input, shape index: {}]   ;;  %s2595_s5 = inlined_call_operand.hbm [shape: bf16[128,128], index: 5, kind: input, shape index: {}]   ;;  %s2596_s6 = inlined_call_operand.vmem [shape: f32[1,128], index: 6, kind: input, shape index: {}]   ;;  %s2597_s7 = inlined_call_operand.vmem [shape: f32[1,128], index: 7, kind: input, shape index: {}]   ;;  %s2598_s8 = inlined_call_operand.hbm [shape: bf16[128,128], index: 8, kind: input, shape index: {}]   ;;  %s2599_s9 = inlined_call_operand.vmem [shape: f32[1,128], index: 9, kind: input, shape index: {}]   ;;  %s2600_s10 = inlined_call_operand.vmem [shape: f32[1,128], index: 10, kind: input, shape index: {}]   ;;  %s2601_s11 = inlined_call_operand.hbm [shape: bf16[128,128], index: 11, kind: input, shape index: {}]   ;;  %s2602_s12 = inlined_call_operand.hbm [shape: bf16[128,128], index: 12, kind: input, shape index: {}]   ;;  %s2603_s13 = inlined_call_operand.vmem [shape: f32[1,128], index: 13, kind: input, shape index: {}]   ;;  %s2604_s14 = inlined_call_operand.vmem [shape: f32[1,128], index: 14, kind: input, shape index: {}]   ;;  %s2605_s15 = inlined_call_operand.hbm [shape: bf16[128,128], index: 15, kind: input, shape index: {}]   ;;  %s2606_s16 = inlined_call_operand.vmem [shape: f32[1,128], index: 16, kind: input, shape index: {}]   ;;  %s2607_s17 = inlined_call_operand.vmem [shape: f32[1,128], index: 17, kind: input, shape index: {}]   ;;  %s2608_s18 = inlined_call_operand.vmem [shape: bf16[32,128], index: 18, kind: output, shape index: {0}]   ;;  %s2609_s19 = inlined_call_operand.vmem [shape: bf16[16,128], index: 19, kind: output, shape index: {1}]  }
   0x1   :  { %2622 = sst [smem:[#allocation32_spill]] %s2590_s0 }
   0x2   :  { %2623 = sst [smem:[#allocation33_spill]] %s2591_s1 }
   0x3   :  { %2624 = sst [smem:[#allocation34_spill]] %s2592_s2 }
   0x4   :  { %2625 = sst [smem:[#allocation35_spill]] %s2593_s3 }
   0x5   :  { %2626 = sst [smem:[#allocation36_spill]] %s2603_s13 }
   0x6   :  { %2627 = sst [smem:[#allocation37_spill]] %s2604_s14 }
   0x7   :  { %2628 = sst [smem:[#allocation38_spill]] %s2606_s16 }
   0x8   :  { %2629 = sst [smem:[#allocation39_spill]] %s2607_s17 }
   0x9   :  { %2630 = sst [smem:[#allocation40_spill]] %s2609_s19 }
   0xa   :  { %25 = vsyncpa [#allocation8], 0 }
   0xb   :  { %26 = vsyncpa [#allocation7], 0 }
   0xc   :  { %27 = vsyncpa [#allocation11], 0 }
   0xd   :  { %28 = vsyncpa [#allocation14], 0 }
   0xe   :  { %29 = vsyncpa [#allocation17], 0  ;;  %s2156_s0 = smov [#allocation10]   ;;  %s2157_s20 = smov [#allocation13]  }
   0xf   :  { %s63_s30 = sshll.u32 %s2156_s0, 4  ;;  %s95_s21 = sshll.u32 %s2157_s20, 4  ;;  %s64_s30 = int_to_ptr.vmem [resolvable:$true] %s63_s30  ;;  %s96_s21 = int_to_ptr.vmem [resolvable:$true] %s95_s21 }
  0x10   :  { %s2022_s1 = scalar_lea.vmem %s64_s30, 1024  ;;  %p2027_p1 = scmp.lt.s32.totalorder %s64_s30, %s64_s30 }
  0x11   :  { %p2023_p0 = scmp.ne.s32.totalorder %s64_s30, %s2022_s1  ;;  %p2028_p2 = scmp.lt.s32.totalorder %s2022_s1, %s2022_s1 }
  0x13   :  { %p2029_p3 = por %p2028_p2, %p2027_p1 }
  0x15   :  { %p2030_p4 = pnand %p2029_p3, %p2023_p0 }
  0x17   :  { %2033 = shalt.err (!%p2030_p4)
}
  0x18   :  { %s2158_s22 = smov 64   ;;  %s2159_s2 = smov 4  }
  0x19   :  { %69 = dma.hbm_to_vmem [thread:$0]  %s2595_s5, 1024, %s64_s30, [#allocation11], %s2158_s22, %s2158_s22, %s2159_s2  }
  0x1a   :  { %s2042_s25 = scalar_lea.vmem %s96_s21, 1024  ;;  %p2047_p6 = scmp.lt.s32.totalorder %s96_s21, %s96_s21 }
  0x1b   :  { %p2043_p5 = scmp.ne.s32.totalorder %s96_s21, %s2042_s25  ;;  %p2048_p7 = scmp.lt.s32.totalorder %s2042_s25, %s2042_s25 }
  0x1d   :  { %p2049_p8 = por %p2048_p7, %p2047_p6 }
  0x1f   :  { %p2050_p9 = pnand %p2049_p8, %p2043_p5 }
  0x21   :  { %2053 = shalt.err (!%p2050_p9)
}
  0x22   :  { %101 = dma.hbm_to_vmem [thread:$0]  %s2601_s11, 1024, %s96_s21, [#allocation14], %s2158_s22, %s2158_s22, %s2159_s2  }
  0x23   :  { %s2631_s29 = sld [smem:[#allocation32_spill]] }
  0x29   :  { %s36_s0 = sshll.u32 %s2631_s29, 4  ;;  %s37_s0 = int_to_ptr.vmem [resolvable:$true] %s36_s0 }
  0x2a   :  { %s2054_s5 = scalar_lea.vmem %s37_s0, 16  ;;  %p2059_p11 = scmp.lt.s32.totalorder %s37_s0, %s37_s0 }
  0x2b   :  { %p2055_p10 = scmp.ne.s32.totalorder %s37_s0, %s2054_s5  ;;  %p2060_p12 = scmp.lt.s32.totalorder %s2054_s5, %s2054_s5 }
  0x2d   :  { %p2061_p13 = por %p2060_p12, %p2059_p11 }
  0x2f   :  { %p2062_p0 = pnand %p2061_p13, %p2055_p10 }
  0x31   :  { %2065 = shalt.err (!%p2062_p0)
}
  0x32   :  { %s2160_s30 = smov [#allocation6]   ;;  %s2161_s20 = smov [#allocation9]  }
  0x33   :  { %39 = dma.vmem_to_smem %s37_s0, 16, %s2160_s30, [#allocation8]  }
  0x34   :  { %s51_s1 = sshll.u32 %s2161_s20, 4  ;;  %s2162_s23 = smov [#allocation12]   ;;  %s52_s1 = int_to_ptr.vmem [resolvable:$true] %s51_s1 }
  0x35   :  { %s79_s24 = sshll.u32 %s2162_s23, 4  ;;  %s2074_s11 = scalar_lea.vmem %s52_s1, 1024  ;;  %s80_s24 = int_to_ptr.vmem [resolvable:$true] %s79_s24 }
  0x36   :  { %p2075_p1 = scmp.ne.s32.totalorder %s52_s1, %s2074_s11  ;;  %p2079_p2 = scmp.lt.s32.totalorder %s52_s1, %s52_s1 }
  0x37   :  { %p2080_p3 = scmp.lt.s32.totalorder %s2074_s11, %s2074_s11 }
  0x39   :  { %p2081_p4 = por %p2080_p3, %p2079_p2 }
  0x3b   :  { %p2082_p5 = pnand %p2081_p4, %p2075_p1 }
  0x3d   :  { %2085 = shalt.err (!%p2082_p5)
}
  0x3e   :  { %57 = dma.hbm_to_vmem [thread:$0]  %s2594_s4, 1024, %s52_s1, [#allocation7], %s2158_s22, %s2158_s22, %s2159_s2  }
  0x3f   :  { %s2094_s3 = scalar_lea.vmem %s80_s24, 1024  ;;  %p2099_p7 = scmp.lt.s32.totalorder %s80_s24, %s80_s24 }
  0x40   :  { %p2095_p6 = scmp.ne.s32.totalorder %s80_s24, %s2094_s3  ;;  %p2100_p8 = scmp.lt.s32.totalorder %s2094_s3, %s2094_s3 }
  0x42   :  { %p2101_p9 = por %p2100_p8, %p2099_p7 }
  0x44   :  { %p2102_p10 = pnand %p2101_p9, %p2095_p6 }
  0x46   :  { %2105 = shalt.err (!%p2102_p10)
}
  0x47   :  { %85 = dma.hbm_to_vmem [thread:$0]  %s2598_s8, 1024, %s80_s24, [#allocation11], %s2158_s22, %s2158_s22, %s2159_s2  }
  0x48   :  { %s2163_s28 = smov [#allocation15]   ;;  %s2164_s0 = smov [#allocation16]  }
  0x49   :  { %s107_s29 = sshll.u32 %s2163_s28, 4  ;;  %s123_s4 = sshll.u32 %s2164_s0, 4  ;;  %s108_s29 = int_to_ptr.vmem [resolvable:$true] %s107_s29  ;;  %s124_s4 = int_to_ptr.vmem [resolvable:$true] %s123_s4 }
  0x4a   :  { %s2114_s5 = scalar_lea.vmem %s108_s29, 1024  ;;  %p2119_p12 = scmp.lt.s32.totalorder %s108_s29, %s108_s29 }
  0x4b   :  { %p2115_p11 = scmp.ne.s32.totalorder %s108_s29, %s2114_s5  ;;  %p2120_p13 = scmp.lt.s32.totalorder %s2114_s5, %s2114_s5 }
  0x4d   :  { %p2121_p0 = por %p2120_p13, %p2119_p12 }
  0x4f   :  { %p2122_p1 = pnand %p2121_p0, %p2115_p11 }
  0x51   :  { %2125 = shalt.err (!%p2122_p1)
}
  0x52   :  { %113 = dma.hbm_to_vmem [thread:$0]  %s2602_s12, 1024, %s108_s29, [#allocation14], %s2158_s22, %s2158_s22, %s2159_s2  }
  0x53   :  { %s2134_s8 = scalar_lea.vmem %s124_s4, 1024  ;;  %p2139_p3 = scmp.lt.s32.totalorder %s124_s4, %s124_s4 }
  0x54   :  { %p2135_p2 = scmp.ne.s32.totalorder %s124_s4, %s2134_s8  ;;  %p2140_p4 = scmp.lt.s32.totalorder %s2134_s8, %s2134_s8 }
  0x56   :  { %p2141_p5 = por %p2140_p4, %p2139_p3 }
  0x58   :  { %p2142_p6 = pnand %p2141_p5, %p2135_p2 }
  0x5a   :  { %2145 = shalt.err (!%p2142_p6)
}
  0x5b   :  { %129 = dma.hbm_to_vmem [thread:$0]  %s2605_s15, 1024, %s124_s4, [#allocation17], %s2158_s22, %s2158_s22, %s2159_s2  }
  0x5c   :  { %2146 = dma.done.wait [#allocation8], 16  }
  0x5d   :  { %2147 = vsyncadd [#allocation8], 4294967280 }
  0x5e   :  { %2148 = dma.done.wait [#allocation7], 1024  }
  0x5f   :  { %2149 = vsyncadd [#allocation7], 4294966272 }
  0x60   :  { %2150 = dma.done.wait [#allocation11], 2048  }
  0x61   :  { %2151 = vsyncadd [#allocation11], 4294965248 }
  0x62   :  { %2152 = dma.done.wait [#allocation14], 2048  }
  0x63   :  { %2153 = vsyncadd [#allocation14], 4294965248 }
  0x64   :  { %2154 = dma.done.wait [#allocation17], 1024  }
  0x65   :  { %2155 = vsyncadd [#allocation17], 4294966272 }
  0x66   :  { %155 = sfence }
  0x67   :  { %v1947_v0 = vld [vmem:[#allocation9 + $0x38] sm:$0xff]   ;;  %s2632_s11 = sld [smem:[#allocation35_spill]]  ;;  %v2165_v2 = vmov 0.0   ;;  %v1949_v3 = vld [vmem:[#allocation9 + $0x30] sm:$0xff]   ;;  %v1951_v5 = vld [vmem:[#allocation9 + $0x28] sm:$0xff]   ;;  %vm2166_vm0 = vmmov 0  }
  0x68   :  { %157 = vst [vmem:[#allocation2] sm:$0xff] %v2165_v2  ;;  %158 = vst [vmem:[#allocation2 + $0x8] sm:$0xff] %v2165_v2  ;;  %1796 = vmatprep.subr.bf16.mxu0 %v1947_v0  ;;  %v1953_v7 = vld [vmem:[#allocation9 + $0x20] sm:$0xff]   ;;  %v1955_v9 = vld [vmem:[#allocation9 + $0x18] sm:$0xff]   ;;  %s2330_s28 = sld [smem:[#allocation6]] }
  0x69   :  { %161 = vst [vmem:[#allocation3] sm:$0xff] %v2165_v2  ;;  %162 = vst [vmem:[#allocation3 + $0x8] sm:$0xff] %v2165_v2  ;;  %1797 = vmatpush3.bf16.msra.mxu0 %v1947_v0  ;;  %v1957_v11 = vld [vmem:[#allocation9 + $0x10] sm:$0xff]   ;;  %s2335_s4 = sld [smem:[#allocation6 + $0x1]]  ;;  %v1959_v14 = vld [vmem:[#allocation9 + $0x8] sm:$0xff]  }
  0x6a   :  { %159 = vst [vmem:[#allocation2 + $0x10] sm:$0xff] %v2165_v2  ;;  %160 = vst [vmem:[#allocation2 + $0x18] sm:$0xff] %v2165_v2  ;;  %1798 = vmatprep.subr.bf16.mxu0 %v1949_v3  ;;  %s2633_s20 = sld [smem:[#allocation34_spill]]  ;;  %v1961_v16 = vld [vmem:[#allocation9] sm:$0xff]   ;;  %v2384_v22 = vld [vmem:[#allocation10 + $0x38] sm:$0xff]  }
  0x6b   :  { %163 = vst [vmem:[#allocation3 + $0x10] sm:$0xff] %v2165_v2  ;;  %165 = vst [vmem:[#allocation5] sm:$0xff] %v2165_v2  ;;  %s2340_s8 = sld [smem:[#allocation6 + $0x2]]  ;;  %v1966_v50 = vld [vmem:[#allocation10 + $0x30] sm:$0xff]   ;;  %v1967_v53 = vld [vmem:[#allocation10 + $0x28] sm:$0xff]  }
  0x6c   :  { %166 = vst [vmem:[#allocation5 + $0x8] sm:$0xff] %v2165_v2  ;;  %s2345_s12 = sld [smem:[#allocation6 + $0x3]]  ;;  %v1968_v54 = vld [vmem:[#allocation10 + $0x20] sm:$0xff]   ;;  %v1969_v55 = vld [vmem:[#allocation10 + $0x18] sm:$0xff]   ;;  %v1970_v56 = vld [vmem:[#allocation10 + $0x10] sm:$0xff]  }
  0x6d   :  { %v1948_v1 = vld [vmem:[%s2632_s11 + $0x38] sm:$0xff]   ;;  %v1950_v4 = vld [vmem:[%s2632_s11 + $0x30] sm:$0xff]   ;;  %v1952_v6 = vld [vmem:[%s2632_s11 + $0x28] sm:$0xff]   ;;  %1799 = vmatpush3.bf16.msra.mxu0 %v1949_v3  ;;  %s2347_s24 = sld [smem:[#allocation6 + $0x4]] }
  0x6e   :  { %1816 = vmatprep.subr.bf16.mxu1 %v1948_v1  ;;  %1800 = vmatprep.subr.bf16.mxu0 %v1951_v5  ;;  %v1954_v8 = vld [vmem:[%s2632_s11 + $0x20] sm:$0xff]   ;;  %v1956_v10 = vld [vmem:[%s2632_s11 + $0x18] sm:$0xff]   ;;  %v1958_v12 = vld [vmem:[%s2632_s11 + $0x10] sm:$0xff]   ;;  %s2349_s15 = sld [smem:[#allocation6 + $0x5]] }
  0x6f   :  { %1817 = vmatpush3.bf16.msra.mxu1 %v1948_v1  ;;  %v1960_v15 = vld [vmem:[%s2632_s11 + $0x8] sm:$0xff]   ;;  %s2634_s21 = sld [smem:[#allocation33_spill]]  ;;  %v1962_v17 = vld [vmem:[%s2632_s11] sm:$0xff]   ;;  %v1971_v57 = vld [vmem:[#allocation10 + $0x8] sm:$0xff]  }
  0x70   :  { %1818 = vmatprep.subr.bf16.mxu1 %v1950_v4  ;;  %v1963_v13 = vld [vmem:[%s2633_s20] sm:$0xff]   ;;  %s2355_s3 = sld [smem:[#allocation6 + $0x6]]  ;;  %v1964_v28 = vld [vmem:[%s2633_s20 + $0x8] sm:$0xff]   ;;  %v1972_v58 = vld [vmem:[#allocation10] sm:$0xff]  }
  0x71   :  { %1801 = vmatpush3.bf16.msra.mxu0 %v1951_v5  ;;  %1832 = vmatprep.mubr.bf16.mxu1 %v1963_v13  ;;  %s2364_s30 = sld [smem:[#allocation6 + $0x7]]  ;;  %v1973_v61 = vld [vmem:[#allocation12 + $0x38] sm:$0xff]   ;;  %v1974_v62 = vld [vmem:[#allocation12 + $0x30] sm:$0xff]   ;;  %v1975_v63 = vld [vmem:[#allocation12 + $0x28] sm:$0xff]  }
  0x72   :  { %1802 = vmatprep.subr.bf16.mxu0 %v1953_v7  ;;  %s2370_s2 = sld [smem:[#allocation6 + $0x8]]  ;;  %v1976_v0 = vld [vmem:[#allocation12 + $0x20] sm:$0xff]   ;;  %v1977_v1 = vld [vmem:[#allocation12 + $0x18] sm:$0xff]   ;;  %v1978_v3 = vld [vmem:[#allocation12 + $0x10] sm:$0xff]  }
  0x73   :  { %1819 = vmatpush3.bf16.msra.mxu1 %v1950_v4  ;;  %s2376_s27 = sld [smem:[#allocation6 + $0x9]]  ;;  %v1979_v4 = vld [vmem:[#allocation12 + $0x8] sm:$0xff]   ;;  %v1980_v5 = vld [vmem:[#allocation12] sm:$0xff]  }
  0x74   :  { %1820 = vmatprep.subr.bf16.mxu1 %v1952_v6  ;;  %s2382_s1 = sld [smem:[#allocation6 + $0xa]] }
  0x75   :  { %1803 = vmatpush3.bf16.msra.mxu0 %v1953_v7  ;;  %s168_s25 = scalar_lea.vmem %s2634_s21, %s2330_s28  ;;  %s173_s5 = scalar_lea.vmem %s2634_s21, %s2335_s4 }
  0x76   :  { %1804 = vmatprep.subr.bf16.mxu0 %v1955_v9  ;;  %v169_v18 = vld [vmem:[%s168_s25] sm:$0x1]  ;;  %s178_s22 = scalar_lea.vmem %s2634_s21, %s2340_s8  ;;  %s183_s26 = scalar_lea.vmem %s2634_s21, %s2345_s12 }
  0x77   :  { %1821 = vmatpush3.bf16.msra.mxu1 %v1952_v6  ;;  %2635 = sst [smem:[#allocation23_spill]] %s2364_s30  ;;  %170 = vst [vmem:[#allocation2] sm:$0x1] %v169_v18  ;;  %171 = vst [vmem:[#allocation3 + $0x1] sm:$0x1] %v169_v18  ;;  %s193_s11 = scalar_lea.vmem %s2634_s21, %s2349_s15 }
  0x78   :  { %1822 = vmatprep.subr.bf16.mxu1 %v1954_v8  ;;  %v174_v19 = vld [vmem:[%s173_s5] sm:$0x1]  ;;  %s188_s5 = scalar_lea.vmem %s2634_s21, %s2347_s24  ;;  %s2390_s25 = sld [smem:[#allocation6 + $0xb]] }
  0x79   :  { %1805 = vmatpush3.bf16.msra.mxu0 %v1955_v9  ;;  %175 = vst [vmem:[#allocation2 + $0x1] sm:$0x1] %v174_v19  ;;  %176 = vst [vmem:[#allocation3] sm:$0x1] %v174_v19  ;;  %v179_v20 = vld [vmem:[%s178_s22] sm:$0x1]  ;;  %s198_s0 = scalar_lea.vmem %s2634_s21, %s2355_s3  ;;  %s203_s22 = scalar_lea.vmem %s2634_s21, %s2364_s30 }
  0x7a   :  { %1806 = vmatprep.subr.bf16.mxu0 %v1957_v11  ;;  %180 = vst [vmem:[#allocation2 + $0x2] sm:$0x1] %v179_v20  ;;  %181 = vst [vmem:[#allocation3 + $0x3] sm:$0x1] %v179_v20  ;;  %v184_v21 = vld [vmem:[%s183_s26] sm:$0x1]  ;;  %s208_s29 = scalar_lea.vmem %s2634_s21, %s2370_s2  ;;  %s213_s23 = scalar_lea.vmem %s2634_s21, %s2376_s27 }
  0x7b   :  { %1823 = vmatpush3.bf16.msra.mxu1 %v1954_v8  ;;  %2636 = sst [smem:[#allocation24_spill]] %s2382_s1  ;;  %185 = vst [vmem:[#allocation2 + $0x3] sm:$0x1] %v184_v21  ;;  %186 = vst [vmem:[#allocation3 + $0x2] sm:$0x1] %v184_v21  ;;  %s218_s26 = scalar_lea.vmem %s2634_s21, %s2382_s1 }
  0x7c   :  { %1824 = vmatprep.subr.bf16.mxu1 %v1956_v10  ;;  %v189_v23 = vld [vmem:[%s188_s5] sm:$0x1]  ;;  %s2396_s19 = sld [smem:[#allocation6 + $0xc]] }
  0x7d   :  { %1807 = vmatpush3.bf16.msra.mxu0 %v1957_v11  ;;  %190 = vst [vmem:[#allocation2 + $0x4] sm:$0x1] %v189_v23  ;;  %191 = vst [vmem:[#allocation3 + $0x5] sm:$0x1] %v189_v23  ;;  %v194_v24 = vld [vmem:[%s193_s11] sm:$0x1] }
  0x7e   :  { %1808 = vmatprep.subr.bf16.mxu0 %v1959_v14  ;;  %2637 = sst [smem:[#allocation25_spill]] %s2390_s25  ;;  %195 = vst [vmem:[#allocation2 + $0x5] sm:$0x1] %v194_v24  ;;  %196 = vst [vmem:[#allocation3 + $0x4] sm:$0x1] %v194_v24  ;;  %s223_s20 = scalar_lea.vmem %s2634_s21, %s2390_s25 }
  0x7f   :  { %1825 = vmatpush3.bf16.msra.mxu1 %v1956_v10  ;;  %v199_v25 = vld [vmem:[%s198_s0] sm:$0x1]  ;;  %s2402_s17 = sld [smem:[#allocation6 + $0xd]] }
  0x80   :  { %1826 = vmatprep.subr.bf16.mxu1 %v1958_v12  ;;  %200 = vst [vmem:[#allocation2 + $0x6] sm:$0x1] %v199_v25  ;;  %201 = vst [vmem:[#allocation3 + $0x7] sm:$0x1] %v199_v25  ;;  %v204_v26 = vld [vmem:[%s203_s22] sm:$0x1] }
  0x81   :  { %1809 = vmatpush3.bf16.msra.mxu0 %v1959_v14  ;;  %s2408_s16 = sld [smem:[#allocation6 + $0xe]]  ;;  %205 = vst [vmem:[#allocation2 + $0x7] sm:$0x1] %v204_v26  ;;  %206 = vst [vmem:[#allocation3 + $0x6] sm:$0x1] %v204_v26 }
  0x82   :  { %1810 = vmatprep.subr.bf16.mxu0 %v1961_v16  ;;  %2638 = sst [smem:[#allocation26_spill]] %s2396_s19  ;;  %v209_v27 = vld [vmem:[%s208_s29] sm:$0x1]  ;;  %s228_s22 = scalar_lea.vmem %s2634_s21, %s2396_s19 }
  0x83   :  { %1827 = vmatpush3.bf16.msra.mxu1 %v1958_v12  ;;  %s2414_s14 = sld [smem:[#allocation6 + $0xf]]  ;;  %210 = vst [vmem:[#allocation2 + $0x8] sm:$0x1] %v209_v27  ;;  %211 = vst [vmem:[#allocation3 + $0x9] sm:$0x1] %v209_v27 }
  0x84   :  { %1828 = vmatprep.subr.bf16.mxu1 %v1960_v15  ;;  %v214_v29 = vld [vmem:[%s213_s23] sm:$0x1]  ;;  %s2423_s29 = sld [smem:[#allocation6 + $0x10]] }
  0x85   :  { %2639 = sst [smem:[#allocation27_spill]] %s2402_s17  ;;  %1811 = vmatpush3.bf16.msra.mxu0 %v1961_v16  ;;  %215 = vst [vmem:[#allocation2 + $0x9] sm:$0x1] %v214_v29  ;;  %216 = vst [vmem:[#allocation3 + $0x8] sm:$0x1] %v214_v29  ;;  %s233_s0 = scalar_lea.vmem %s2634_s21, %s2402_s17 }
  0x86   :  { %1836 = vmatprep.subr.bf16.mxu0 %v2384_v22  ;;  %v219_v30 = vld [vmem:[%s218_s26] sm:$0x1]  ;;  %s2430_s30 = sld [smem:[#allocation6 + $0x11]] }
  0x87   :  { %1829 = vmatpush3.bf16.msra.mxu1 %v1960_v15  ;;  %2640 = sst [smem:[#allocation28_spill]] %s2408_s16  ;;  %220 = vst [vmem:[#allocation2 + $0xa] sm:$0x1] %v219_v30  ;;  %221 = vst [vmem:[#allocation3 + $0xb] sm:$0x1] %v219_v30  ;;  %s238_s23 = scalar_lea.vmem %s2634_s21, %s2408_s16 }
  0x88   :  { %1830 = vmatprep.subr.bf16.mxu1 %v1962_v17  ;;  %v224_v31 = vld [vmem:[%s223_s20] sm:$0x1]  ;;  %s2436_s11 = sld [smem:[#allocation6 + $0x12]] }
  0x89   :  { %2641 = sst [smem:[#allocation29_spill]] %s2414_s14  ;;  %225 = vst [vmem:[#allocation2 + $0xb] sm:$0x1] %v224_v31  ;;  %226 = vst [vmem:[#allocation3 + $0xa] sm:$0x1] %v224_v31  ;;  %s243_s26 = scalar_lea.vmem %s2634_s21, %s2414_s14  ;;  %v314_v39 = vld [vmem:[#allocation2] sm:$0xff] }
  0x8a   :  { %2642 = sst [smem:[#allocation30_spill]] %s2423_s29  ;;  %v229_v32 = vld [vmem:[%s228_s22] sm:$0x1]  ;;  %s248_s5 = scalar_lea.vmem %s2634_s21, %s2423_s29 }
  0x8b   :  { %1831 = vmatpush3.bf16.msra.mxu1 %v1962_v17  ;;  %s2442_s13 = sld [smem:[#allocation6 + $0x13]]  ;;  %230 = vst [vmem:[#allocation2 + $0xc] sm:$0x1] %v229_v32  ;;  %231 = vst [vmem:[#allocation3 + $0xd] sm:$0x1] %v229_v32  ;;  %v320_v47 = vld [vmem:[#allocation3] sm:$0xff] }
  0x8c   :  { %v234_v33 = vld [vmem:[%s233_s0] sm:$0x1]  ;;  %s2448_s19 = sld [smem:[#allocation6 + $0x14]]  ;;  %s253_s1 = scalar_lea.vmem %s2634_s21, %s2430_s30  ;;  %1856 = vmatprep.subr.bf16.mxu1 %v1973_v61 }
  0x8d   :  { %235 = vst [vmem:[#allocation2 + $0xd] sm:$0x1] %v234_v33  ;;  %236 = vst [vmem:[#allocation3 + $0xc] sm:$0x1] %v234_v33  ;;  %v239_v34 = vld [vmem:[%s238_s23] sm:$0x1] }
  0x8e   :  { %1833 = vmatmul.mubr.bf16.vlgmr.msra.gmra.mxu1 %v1964_v28  ;;  %s2454_s17 = sld [smem:[#allocation6 + $0x15]]  ;;  %240 = vst [vmem:[#allocation2 + $0xe] sm:$0x1] %v239_v34  ;;  %241 = vst [vmem:[#allocation3 + $0xf] sm:$0x1] %v239_v34  ;;  %s258_s0 = scalar_lea.vmem %s2634_s21, %s2436_s11 }
  0x8f   :  { %v244_v35 = vld [vmem:[%s243_s26] sm:$0x1]  ;;  %s2460_s16 = sld [smem:[#allocation6 + $0x16]]  ;;  %1857 = vmatpush3.bf16.msra.mxu1 %v1973_v61  ;;  %s957_s23 = scalar_lea.vmem [#allocation5], %s2330_s28 }
  0x90   :  { %245 = vst [vmem:[#allocation2 + $0xf] sm:$0x1] %v244_v35  ;;  %246 = vst [vmem:[#allocation3 + $0xe] sm:$0x1] %v244_v35  ;;  %v249_v36 = vld [vmem:[%s248_s5] sm:$0x1]  ;;  %1858 = vmatprep.subr.bf16.mxu1 %v1974_v62 }
  0x91   :  { %2643 = sst [smem:[#allocation31_spill]] %s2442_s13  ;;  %250 = vst [vmem:[#allocation2 + $0x10] sm:$0x1] %v249_v36  ;;  %251 = vst [vmem:[#allocation3 + $0x11] sm:$0x1] %v249_v36  ;;  %s263_s29 = scalar_lea.vmem %s2634_s21, %s2442_s13 }
  0x92   :  { %s2466_s14 = sld [smem:[#allocation6 + $0x17]]  ;;  %v254_v37 = vld [vmem:[%s253_s1] sm:$0x1]  ;;  %s268_s1 = scalar_lea.vmem %s2634_s21, %s2448_s19 }
  0x93   :  { %255 = vst [vmem:[#allocation2 + $0x11] sm:$0x1] %v254_v37  ;;  %256 = vst [vmem:[#allocation3 + $0x10] sm:$0x1] %v254_v37  ;;  %v259_v38 = vld [vmem:[%s258_s0] sm:$0x1]  ;;  %1859 = vmatpush3.bf16.msra.mxu1 %v1974_v62 }
  0x94   :  { %260 = vst [vmem:[#allocation2 + $0x12] sm:$0x1] %v259_v38  ;;  %261 = vst [vmem:[#allocation3 + $0x13] sm:$0x1] %v259_v38  ;;  %v264_v40 = vld [vmem:[%s263_s29] sm:$0x1]  ;;  %s273_s0 = scalar_lea.vmem %s2634_s21, %s2454_s17  ;;  %1860 = vmatprep.subr.bf16.mxu1 %v1975_v63 }
  0x95   :  { %265 = vst [vmem:[#allocation2 + $0x13] sm:$0x1] %v264_v40  ;;  %266 = vst [vmem:[#allocation3 + $0x12] sm:$0x1] %v264_v40  ;;  %v269_v41 = vld [vmem:[%s268_s1] sm:$0x1]  ;;  %s278_s13 = scalar_lea.vmem %s2634_s21, %s2460_s16 }
  0x96   :  { %270 = vst [vmem:[#allocation2 + $0x14] sm:$0x1] %v269_v41  ;;  %271 = vst [vmem:[#allocation3 + $0x15] sm:$0x1] %v269_v41  ;;  %v274_v42 = vld [vmem:[%s273_s0] sm:$0x1] }
  0x97   :  { %275 = vst [vmem:[#allocation2 + $0x15] sm:$0x1] %v274_v42  ;;  %276 = vst [vmem:[#allocation3 + $0x14] sm:$0x1] %v274_v42  ;;  %v279_v43 = vld [vmem:[%s278_s13] sm:$0x1]  ;;  %1861 = vmatpush3.bf16.msra.mxu1 %v1975_v63 }
  0x98   :  { %s283_s22 = scalar_lea.vmem %s2634_s21, %s2466_s14  ;;  %v315_v44 = vld [vmem:[#allocation2 + $0x8] sm:$0xff]  ;;  %280 = vst [vmem:[#allocation2 + $0x16] sm:$0x1] %v279_v43  ;;  %281 = vst [vmem:[#allocation3 + $0x17] sm:$0x1] %v279_v43  ;;  %1862 = vmatprep.subr.bf16.mxu1 %v1976_v0  ;;  %s969_s13 = scalar_lea.vmem [#allocation5], %s2340_s8 }
  0x99   :  { %v284_v45 = vld [vmem:[%s283_s22] sm:$0x1]  ;;  %v318_v46 = vpack.c.bf16 %v315_v44, %v314_v39  ;;  %v321_v48 = vld [vmem:[#allocation3 + $0x8] sm:$0xff]  ;;  %s963_s22 = scalar_lea.vmem [#allocation5], %s2335_s4  ;;  %s2644_s28 = sld [smem:[#allocation23_spill]] }
  0x9a   :  { %285 = vst [vmem:[#allocation2 + $0x17] sm:$0x1] %v284_v45  ;;  %286 = vst [vmem:[#allocation3 + $0x16] sm:$0x1] %v284_v45  ;;  %v324_v51 = vpack.c.bf16 %v321_v48, %v320_v47  ;;  %v1639_v62 = vld [vmem:[%s2597_s7] ss:$0 sm:$0xff] }
  0x9b   :  { %1812 = vmatprep.mubr.bf16.mxu0 %v318_v46  ;;  %1863 = vmatpush3.bf16.msra.mxu1 %v1976_v0  ;;  %s981_s1 = scalar_lea.vmem [#allocation5], %s2347_s24  ;;  %s987_s4 = scalar_lea.vmem [#allocation5], %s2349_s15 }
  0x9c   :  { %1864 = vmatprep.subr.bf16.mxu1 %v1977_v1  ;;  %s993_s8 = scalar_lea.vmem [#allocation5], %s2355_s3  ;;  %s1005_s24 = scalar_lea.vmem [#allocation5], %s2370_s2 }
  0x9d   :  { %s1011_s15 = scalar_lea.vmem [#allocation5], %s2376_s27  ;;  %s2645_s3 = sld [smem:[#allocation24_spill]] }
  0x9e   :  { %s2646_s27 = sld [smem:[#allocation25_spill]] }
  0x9f   :  { %1865 = vmatpush3.bf16.msra.mxu1 %v1977_v1  ;;  %s2647_s26 = sld [smem:[#allocation26_spill]] }
  0xa0   :  { %1866 = vmatprep.subr.bf16.mxu1 %v1978_v3  ;;  %s2651_s29 = sld [smem:[#allocation30_spill]] }
  0xa1   :  { %v316_v49 = vld [vmem:[#allocation2 + $0x10] sm:$0xff]  ;;  %s2656_s7 = sld [smem:[#allocation39_spill]] }
  0xa2   :  { %v319_v52 = vpack.c.bf16 %v2165_v2, %v316_v49  ;;  %v322_v59 = vld [vmem:[#allocation3 + $0x10] sm:$0xff] }
  0xa3   :  { %v325_v60 = vpack.c.bf16 %v2165_v2, %v322_v59  ;;  %1867 = vmatpush3.bf16.msra.mxu1 %v1978_v3  ;;  %s1017_s2 = scalar_lea.vmem [#allocation5], %s2645_s3  ;;  %s2654_s3 = sld [smem:[#allocation37_spill]] }
  0xa4   :  { %1813 = vmatmul.mubr.bf16.vlgmr.msra.gmra.mxu0 %v319_v52  ;;  %1868 = vmatprep.subr.bf16.mxu1 %v1979_v4  ;;  %s1023_s25 = scalar_lea.vmem [#allocation5], %s2646_s27 }
  0xa5   :  { %1837 = vmatpush3.bf16.msra.mxu0 %v2384_v22  ;;  %1852 = vmatprep.mubr.bf16.mxu0 %v324_v51  ;;  %s1029_s5 = scalar_lea.vmem [#allocation5], %s2647_s26 }
  0xa6   :  { %1838 = vmatprep.subr.bf16.mxu0 %v1966_v50 }
  0xa7   :  { %1869 = vmatpush3.bf16.msra.mxu1 %v1979_v4 }
  0xa8   :  { %1870 = vmatprep.subr.bf16.mxu1 %v1980_v5 }
  0xa9   :  { %1839 = vmatpush3.bf16.msra.mxu0 %v1966_v50 }
  0xaa   :  { %1840 = vmatprep.subr.bf16.mxu0 %v1967_v53 }
  0xab   :  { %1871 = vmatpush3.bf16.msra.mxu1 %v1980_v5 }
  0xac   :  { %1896 = vmatprep.subr.bf16.mxu1 %v2165_v2 }
  0xad   :  { %1841 = vmatpush3.bf16.msra.mxu0 %v1967_v53 }
  0xae   :  { %1842 = vmatprep.subr.bf16.mxu0 %v1968_v54 }
  0xb1   :  { %1843 = vmatpush3.bf16.msra.mxu0 %v1968_v54 }
  0xb2   :  { %1844 = vmatprep.subr.bf16.mxu0 %v1969_v55 }
  0xb5   :  { %1845 = vmatpush3.bf16.msra.mxu0 %v1969_v55 }
  0xb6   :  { %1846 = vmatprep.subr.bf16.mxu0 %v1970_v56 }
  0xb9   :  { %1847 = vmatpush3.bf16.msra.mxu0 %v1970_v56 }
  0xba   :  { %1848 = vmatprep.subr.bf16.mxu0 %v1971_v57 }
  0xbd   :  { %1849 = vmatpush3.bf16.msra.mxu0 %v1971_v57  ;;  %v1638_v57 = vld [vmem:[%s2596_s6] ss:$0 sm:$0xff] }
  0xbe   :  { %1850 = vmatprep.subr.bf16.mxu0 %v1972_v58 }
  0xc1   :  { %1851 = vmatpush3.bf16.msra.mxu0 %v1972_v58 }
  0xc2   :  { %1876 = vmatprep.subr.bf16.mxu0 %v2165_v2 }
  0xc4   :  { %1853 = vmatmul.mubr.bf16.vlgmr.msra.gmra.mxu0 %v325_v60 }
 0x14e   :  { %v1834_v7 = vpop.f32.mrf.mxu1 }
 0x150   :  { %v549_v9 = vpop.f32.mrf.mxu1 }
 0x152   :  { %v1835_v11 = vpop.f32.mrf.mxu1 }
 0x154   :  { %v552_v14 = vpop.f32.mrf.mxu1 }
 0x164   :  { %v1814_v6 = vpop.f32.mrf.mxu0 }
 0x165   :  { %v558_v21 = vadd.f32 %v1834_v7, %v1814_v6 }
 0x166   :  { %v440_v8 = vpop.f32.mrf.mxu0 }
 0x167   :  { %v550_v17 = vadd.f32 %v549_v9, %v440_v8 }
 0x168   :  { %v1815_v10 = vpop.f32.mrf.mxu0 }
 0x169   :  { %v561_v18 = vadd.f32 %v1835_v11, %v1815_v10 }
 0x16a   :  { %v443_v12 = vpop.f32.mrf.mxu0 }
 0x16b   :  { %v553_v19 = vadd.f32 %v552_v14, %v443_v12 }
 0x184   :  { %v1854_v13 = vpop.f32.mrf.mxu0 }
 0x185   :  { %v679_v2 = vadd.f32 %v1854_v13, %v558_v21 }
 0x186   :  { %v662_v15 = vpop.f32.mrf.mxu0 }
 0x187   :  { %v677_v22 = vadd.f32 %v662_v15, %v550_v17 }
 0x188   :  { %v1855_v16 = vpop.f32.mrf.mxu0 }
 0x189   :  { %v680_v23 = vadd.f32 %v1855_v16, %v561_v18 }
 0x18a   :  { %v665_v20 = vpop.f32.mrf.mxu0 }
 0x18b   :  { %v678_v24 = vadd.f32 %v665_v20, %v553_v19  ;;  %v686_v26 = vmul.f32 0.0, %v680_v23 }
 0x18d   :  { %v687_v25 = vadd.f32 %v678_v24, %v677_v22 }
 0x18f   :  { %v688_v27 = vadd.f32 %v687_v25, %v679_v2 }
 0x191   :  { %v689_v28 = vadd.f32 %v688_v27, %v686_v26 }
 0x193   :  { %v690_v29 = vrot.slane %v689_v28, 4 }
 0x195   :  { %v691_v30 = vadd.f32 %v690_v29, %v689_v28 }
 0x197   :  { %v692_v31 = vrot.slane %v691_v30, 2 }
 0x199   :  { %v693_v32 = vadd.f32 %v692_v31, %v691_v30 }
 0x19b   :  { %v694_v33 = vrot.slane %v693_v32, 1 }
 0x19d   :  { %v695_v34 = vadd.f32 %v694_v33, %v693_v32 }
 0x19f   :  { %v696_v35 = vmul.f32 0.041666668, %v695_v34 }
 0x1a1   :  { %v697_v36 = vsub.f32 %v677_v22, %v696_v35  ;;  %v698_v37 = vsub.f32 %v678_v24, %v696_v35  ;;  %v699_v38 = vsub.f32 %v679_v2, %v696_v35  ;;  %v700_v39 = vsub.f32 %v680_v23, %v696_v35 }
 0x1a3   :  { %v701_v40 = vmul.f32 %v697_v36, %v697_v36  ;;  %v702_v41 = vmul.f32 %v698_v37, %v698_v37  ;;  %v704_v42 = vmul.f32 %v700_v39, %v700_v39  ;;  %v703_v43 = vmul.f32 %v699_v38, %v699_v38 }
 0x1a5   :  { %v709_v44 = vadd.f32 %v702_v41, %v701_v40  ;;  %v708_v45 = vmul.f32 0.0, %v704_v42 }
 0x1a7   :  { %v710_v46 = vadd.f32 %v709_v44, %v703_v43 }
 0x1a9   :  { %v711_v47 = vadd.f32 %v710_v46, %v708_v45 }
 0x1ab   :  { %v712_v48 = vrot.slane %v711_v47, 4 }
 0x1ad   :  { %v713_v49 = vadd.f32 %v712_v48, %v711_v47 }
 0x1af   :  { %v714_v50 = vrot.slane %v713_v49, 2 }
 0x1b1   :  { %v715_v51 = vadd.f32 %v714_v50, %v713_v49  ;;  %v1648_v49 = vld [vmem:[%s2599_s9] ss:$0 sm:$0xff]  ;;  %s2648_s9 = sld [smem:[#allocation27_spill]] }
 0x1b3   :  { %v716_v52 = vrot.slane %v715_v51, 1 }
 0x1b5   :  { %v717_v53 = vadd.f32 %v716_v52, %v715_v51 }
 0x1b7   :  { %v718_v54 = vmul.f32 0.041666668, %v717_v53 }
 0x1b9   :  { %v719_v55 = vadd.f32 1e-05, %v718_v54  ;;  %v1649_v54 = vld [vmem:[%s2600_s10] ss:$0 sm:$0xff]  ;;  %s2649_s10 = sld [smem:[#allocation28_spill]] }
 0x1bb   :  { %2005 = vrsqrt.f32 %v719_v55 }
 0x1c8   :  { %v2006_v56 = vpop.eup %2005 }
 0x1c9   :  { %v722_v58 = vmul.f32 %v2006_v56, %v698_v37  ;;  %v721_v59 = vmul.f32 %v2006_v56, %v697_v36  ;;  %v723_v60 = vmul.f32 %v2006_v56, %v699_v38  ;;  %v724_v61 = vmul.f32 %v2006_v56, %v700_v39 }
 0x1cb   :  { %v732_v63 = vmul.f32 %v1638_v57, %v722_v58  ;;  %v731_v0 = vmul.f32 %v1638_v57, %v721_v59  ;;  %v733_v1 = vmul.f32 %v1638_v57, %v723_v60  ;;  %v734_v3 = vmul.f32 %v1638_v57, %v724_v61 }
 0x1cd   :  { %v741_v4 = vadd.f32 %v1639_v62, %v731_v0  ;;  %v742_v5 = vadd.f32 %v1639_v62, %v732_v63  ;;  %v743_v6 = vadd.f32 %v1639_v62, %v733_v1  ;;  %v744_v7 = vadd.f32 %v1639_v62, %v734_v3 }
 0x1cf   :  { %v745_v8 = vmax.f32 %v741_v4, 0.0  ;;  %v746_v9 = vmax.f32 %v742_v5, 0.0  ;;  %v747_v10 = vmax.f32 %v743_v6, 0.0  ;;  %v748_v11 = vmax.f32 %v744_v7, 0.0  ;;  %v958_v6 = vld [vmem:[%s957_s23] sm:$0x1] }
 0x1d1   :  { %v749_v12 = vpack.c.bf16 %v746_v9, %v745_v8  ;;  %v750_v13 = vpack.c.bf16 %v748_v11, %v747_v10 }
 0x1d3   :  { %1872 = vmatprep.mubr.bf16.mxu1 %v749_v12 }
 0x1d4   :  { %1873 = vmatmul.mubr.bf16.vlgmr.msra.gmra.mxu1 %v750_v13 }
 0x294   :  { %v1874_v14 = vpop.f32.mrf.mxu1 }
 0x296   :  { %v849_v15 = vpop.f32.mrf.mxu1 }
 0x298   :  { %v1875_v16 = vpop.f32.mrf.mxu1 }
 0x299   :  { %v869_v19 = vmul.f32 0.0, %v1875_v16 }
 0x29a   :  { %v852_v17 = vpop.f32.mrf.mxu1 }
 0x29b   :  { %v870_v18 = vadd.f32 %v852_v17, %v849_v15 }
 0x29d   :  { %v871_v20 = vadd.f32 %v1874_v14, %v870_v18 }
 0x29f   :  { %v872_v21 = vadd.f32 %v871_v20, %v869_v19 }
 0x2a1   :  { %v873_v22 = vrot.slane %v872_v21, 4 }
 0x2a3   :  { %v874_v23 = vadd.f32 %v873_v22, %v872_v21 }
 0x2a5   :  { %v875_v24 = vrot.slane %v874_v23, 2 }
 0x2a7   :  { %v876_v2 = vadd.f32 %v875_v24, %v874_v23 }
 0x2a9   :  { %v877_v25 = vrot.slane %v876_v2, 1 }
 0x2ab   :  { %v878_v26 = vadd.f32 %v877_v25, %v876_v2 }
 0x2ad   :  { %v879_v27 = vmul.f32 0.041666668, %v878_v26 }
 0x2af   :  { %v880_v28 = vsub.f32 %v849_v15, %v879_v27  ;;  %v881_v29 = vsub.f32 %v852_v17, %v879_v27  ;;  %v882_v30 = vsub.f32 %v1874_v14, %v879_v27  ;;  %v883_v31 = vsub.f32 %v1875_v16, %v879_v27 }
 0x2b1   :  { %v884_v32 = vmul.f32 %v880_v28, %v880_v28  ;;  %v885_v33 = vmul.f32 %v881_v29, %v881_v29  ;;  %v887_v34 = vmul.f32 %v883_v31, %v883_v31  ;;  %v886_v35 = vmul.f32 %v882_v30, %v882_v30 }
 0x2b3   :  { %v892_v36 = vadd.f32 %v885_v33, %v884_v32  ;;  %v891_v37 = vmul.f32 0.0, %v887_v34  ;;  %v1981_v32 = vld [vmem:[#allocation13 + $0x38] sm:$0xff]   ;;  %v2524_v33 = vld [vmem:[#allocation2 + $0x18] sm:$0xff]  ;;  %v1982_v34 = vld [vmem:[#allocation13 + $0x30] sm:$0xff]  }
 0x2b4   :  { %1897 = vmatpush3.bf16.msra.mxu1 %v1981_v32  ;;  %1912 = vmatprep.mubr.msk.bf16.mxu1 %vm2166_vm0, %v2524_v33 }
 0x2b5   :  { %v893_v38 = vadd.f32 %v892_v36, %v886_v35  ;;  %1898 = vmatprep.subr.bf16.mxu1 %v2524_v33  ;;  %1892 = vmatprep.mubr.msk.bf16.mxu0 %vm2166_vm0, %v2524_v33 }
 0x2b7   :  { %v894_v39 = vadd.f32 %v893_v38, %v891_v37  ;;  %v1983_v37 = vld [vmem:[#allocation15 + $0x38] sm:$0xff]  }
 0x2b8   :  { %1899 = vmatpush3.bf16.msra.mxu1 %v1982_v34  ;;  %1877 = vmatpush3.bf16.msra.mxu0 %v1983_v37 }
 0x2b9   :  { %v895_v40 = vrot.slane %v894_v39, 4  ;;  %1900 = vmatprep.subr.bf16.mxu1 %v2524_v33  ;;  %1878 = vmatprep.subr.bf16.mxu0 %v2524_v33 }
 0x2bb   :  { %v896_v41 = vadd.f32 %v895_v40, %v894_v39  ;;  %v1984_v39 = vld [vmem:[#allocation13 + $0x28] sm:$0xff]   ;;  %v1985_v40 = vld [vmem:[#allocation15 + $0x30] sm:$0xff]  }
 0x2bc   :  { %1901 = vmatpush3.bf16.msra.mxu1 %v1984_v39  ;;  %1879 = vmatpush3.bf16.msra.mxu0 %v1985_v40 }
 0x2bd   :  { %v897_v42 = vrot.slane %v896_v41, 2  ;;  %1902 = vmatprep.subr.bf16.mxu1 %v2524_v33  ;;  %1880 = vmatprep.subr.bf16.mxu0 %v2524_v33 }
 0x2bf   :  { %v898_v43 = vadd.f32 %v897_v42, %v896_v41  ;;  %v1986_v41 = vld [vmem:[#allocation13 + $0x20] sm:$0xff]   ;;  %v1987_v42 = vld [vmem:[#allocation15 + $0x28] sm:$0xff]  }
 0x2c0   :  { %1903 = vmatpush3.bf16.msra.mxu1 %v1986_v41  ;;  %1881 = vmatpush3.bf16.msra.mxu0 %v1987_v42  ;;  %v1997_v41 = vld [vmem:[#allocation16 + $0x38] sm:$0xff]   ;;  %v1998_v42 = vld [vmem:[#allocation16 + $0x30] sm:$0xff]  }
 0x2c1   :  { %v899_v44 = vrot.slane %v898_v43, 1  ;;  %1904 = vmatprep.subr.bf16.mxu1 %v2524_v33  ;;  %1882 = vmatprep.subr.bf16.mxu0 %v2524_v33 }
 0x2c3   :  { %v900_v45 = vadd.f32 %v899_v44, %v898_v43 }
 0x2c5   :  { %v901_v46 = vmul.f32 0.041666668, %v900_v45  ;;  %v1988_v45 = vld [vmem:[#allocation13 + $0x18] sm:$0xff]  }
 0x2c6   :  { %1905 = vmatpush3.bf16.msra.mxu1 %v1988_v45  ;;  %v2001_v45 = vld [vmem:[#allocation16 + $0x18] sm:$0xff]  }
 0x2c7   :  { %v902_v47 = vadd.f32 1e-05, %v901_v46  ;;  %1906 = vmatprep.subr.bf16.mxu1 %v2524_v33 }
 0x2c9   :  { %2007 = vrsqrt.f32 %v902_v47  ;;  %v1989_v47 = vld [vmem:[#allocation15 + $0x20] sm:$0xff]  }
 0x2ca   :  { %1883 = vmatpush3.bf16.msra.mxu0 %v1989_v47  ;;  %v2003_v47 = vld [vmem:[#allocation16 + $0x8] sm:$0xff]  }
 0x2cb   :  { %1884 = vmatprep.subr.bf16.mxu0 %v2524_v33 }
 0x2d6   :  { %v2008_v48 = vpop.eup %2007 }
 0x2d7   :  { %v904_v50 = vmul.f32 %v2008_v48, %v880_v28  ;;  %v905_v51 = vmul.f32 %v2008_v48, %v881_v29  ;;  %v906_v52 = vmul.f32 %v2008_v48, %v882_v30  ;;  %v907_v53 = vmul.f32 %v2008_v48, %v883_v31  ;;  %v1990_v48 = vld [vmem:[#allocation13 + $0x10] sm:$0xff]  }
 0x2d8   :  { %1907 = vmatpush3.bf16.msra.mxu1 %v1990_v48  ;;  %v2004_v48 = vld [vmem:[#allocation16] sm:$0xff]  }
 0x2d9   :  { %v914_v55 = vmul.f32 %v1648_v49, %v904_v50  ;;  %v915_v56 = vmul.f32 %v1648_v49, %v905_v51  ;;  %v916_v57 = vmul.f32 %v1648_v49, %v906_v52  ;;  %v917_v58 = vmul.f32 %v1648_v49, %v907_v53  ;;  %v1991_v49 = vld [vmem:[#allocation15 + $0x18] sm:$0xff]   ;;  %v1992_v50 = vld [vmem:[#allocation13 + $0x8] sm:$0xff]   ;;  %1908 = vmatprep.subr.bf16.mxu1 %v2524_v33  ;;  %v1993_v51 = vld [vmem:[#allocation15 + $0x10] sm:$0xff]  }
 0x2da   :  { %1885 = vmatpush3.bf16.msra.mxu0 %v1991_v49  ;;  %v1994_v53 = vld [vmem:[#allocation13] sm:$0xff]  }
 0x2db   :  { %v924_v59 = vadd.f32 %v1649_v54, %v914_v55  ;;  %v925_v60 = vadd.f32 %v1649_v54, %v915_v56  ;;  %v926_v61 = vadd.f32 %v1649_v54, %v916_v57  ;;  %v927_v62 = vadd.f32 %v1649_v54, %v917_v58  ;;  %1886 = vmatprep.subr.bf16.mxu0 %v2524_v33  ;;  %v1100_v55 = vld [vmem:[%s2634_s21] sm:$0xff]  ;;  %v1101_v56 = vld [vmem:[%s2634_s21 + $0x8] sm:$0xff]  ;;  %v1995_v58 = vld [vmem:[#allocation15 + $0x8] sm:$0xff]   ;;  %s2650_s21 = sld [smem:[#allocation29_spill]] }
 0x2dc   :  { %1909 = vmatpush3.bf16.msra.mxu1 %v1992_v50 }
 0x2dd   :  { %v928_v63 = vmax.f32 %v924_v59, 0.0  ;;  %v929_v0 = vmax.f32 %v925_v60, 0.0  ;;  %v930_v1 = vmax.f32 %v926_v61, 0.0  ;;  %v931_v3 = vmax.f32 %v927_v62, 0.0  ;;  %1910 = vmatprep.subr.bf16.mxu1 %v2524_v33  ;;  %v1996_v60 = vld [vmem:[#allocation15] sm:$0xff]  }
 0x2de   :  { %1887 = vmatpush3.bf16.msra.mxu0 %v1993_v51  ;;  %v1102_v59 = vpack.c.bf16 %v1101_v56, %v1100_v55 }
 0x2df   :  { %932 = vst [vmem:[#allocation4] sm:$0xff] %v928_v63  ;;  %933 = vst [vmem:[#allocation4 + $0x8] sm:$0xff] %v929_v0  ;;  %v1716_v4 = vpack.c.bf16 %v929_v0, %v928_v63  ;;  %v1721_v5 = vpack.c.bf16 %v931_v3, %v930_v1  ;;  %1888 = vmatprep.subr.bf16.mxu0 %v2524_v33 }
 0x2e0   :  { %934 = vst [vmem:[#allocation4 + $0x10] sm:$0xff] %v930_v1  ;;  %1911 = vmatpush3.bf16.msra.mxu1 %v1994_v53 }
 0x2e1   :  { %1717 = vst [vmem:[%s2608_s18] sm:$0xff] %v1716_v4   ;;  %1728 = vst [vmem:[%s2608_s18 + $0x8] sm:$0xff] %v1721_v5   ;;  %s975_s18 = scalar_lea.vmem [#allocation5], %s2345_s12  ;;  %s999_s12 = scalar_lea.vmem [#allocation5], %s2644_s28 }
 0x2e2   :  { %1889 = vmatpush3.bf16.msra.mxu0 %v1995_v58  ;;  %s1053_s28 = scalar_lea.vmem [#allocation5], %s2651_s29 }
 0x2e3   :  { %1913 = vmatmul.mubr.bf16.vlgmr.msra.gmra.mxu1 %v1102_v59  ;;  %1890 = vmatprep.subr.bf16.mxu0 %v2524_v33 }
 0x2e6   :  { %v959_v7 = vld [vmem:[#allocation4] sm:$0x1]  ;;  %v965_v10 = vld [vmem:[#allocation4 + $0x1] sm:$0x1]  ;;  %v971_v13 = vld [vmem:[#allocation4 + $0x2] sm:$0x1]  ;;  %1891 = vmatpush3.bf16.msra.mxu0 %v1996_v60 }
 0x2e7   :  { %v960_v8 = vadd.f32 %v959_v7, %v958_v6  ;;  %v977_v16 = vld [vmem:[#allocation4 + $0x3] sm:$0x1]  ;;  %v983_v19 = vld [vmem:[#allocation4 + $0x4] sm:$0x1]  ;;  %v989_v22 = vld [vmem:[#allocation4 + $0x5] sm:$0x1]  ;;  %1916 = vmatprep.subr.bf16.mxu0 %v2524_v33 }
 0x2e8   :  { %v995_v2 = vld [vmem:[#allocation4 + $0x6] sm:$0x1]  ;;  %v1001_v27 = vld [vmem:[#allocation4 + $0x7] sm:$0x1]  ;;  %v1007_v30 = vld [vmem:[#allocation4 + $0x8] sm:$0x1] }
 0x2e9   :  { %961 = vst [vmem:[%s957_s23] sm:$0x1] %v960_v8  ;;  %v1013_v36 = vld [vmem:[#allocation4 + $0x9] sm:$0x1]  ;;  %v1019_v44 = vld [vmem:[#allocation4 + $0xa] sm:$0x1]  ;;  %s1035_s23 = scalar_lea.vmem [#allocation5], %s2648_s9 }
 0x2ea   :  { %v1025_v52 = vld [vmem:[#allocation4 + $0xb] sm:$0x1]  ;;  %v1031_v62 = vld [vmem:[#allocation4 + $0xc] sm:$0x1]  ;;  %v1037_v1 = vld [vmem:[#allocation4 + $0xd] sm:$0x1] }
 0x2eb   :  { %v1043_v5 = vld [vmem:[#allocation4 + $0xe] sm:$0x1]  ;;  %v1049_v8 = vld [vmem:[#allocation4 + $0xf] sm:$0x1]  ;;  %s2657_s9 = sld [smem:[#allocation40_spill]] }
 0x2f0   :  { %v964_v9 = vld [vmem:[%s963_s22] sm:$0x1] }
 0x2f1   :  { %v966_v11 = vadd.f32 %v965_v10, %v964_v9 }
 0x2f3   :  { %967 = vst [vmem:[%s963_s22] sm:$0x1] %v966_v11  ;;  %s1041_s22 = scalar_lea.vmem [#allocation5], %s2649_s10  ;;  %v1055_v11 = vld [vmem:[#allocation4 + $0x10] sm:$0x1] }
 0x2fa   :  { %v970_v12 = vld [vmem:[%s969_s13] sm:$0x1] }
 0x2fb   :  { %v972_v14 = vadd.f32 %v971_v13, %v970_v12 }
 0x2fd   :  { %973 = vst [vmem:[%s969_s13] sm:$0x1] %v972_v14  ;;  %s1047_s13 = scalar_lea.vmem [#allocation5], %s2650_s21  ;;  %v1061_v14 = vld [vmem:[#allocation4 + $0x11] sm:$0x1] }
 0x304   :  { %v976_v15 = vld [vmem:[%s975_s18] sm:$0x1] }
 0x305   :  { %v978_v17 = vadd.f32 %v977_v16, %v976_v15 }
 0x307   :  { %979 = vst [vmem:[%s975_s18] sm:$0x1] %v978_v17  ;;  %s2652_s18 = sld [smem:[#allocation31_spill]]  ;;  %v1067_v17 = vld [vmem:[#allocation4 + $0x12] sm:$0x1] }
 0x30e   :  { %v982_v18 = vld [vmem:[%s981_s1] sm:$0x1] }
 0x30f   :  { %v984_v20 = vadd.f32 %v983_v19, %v982_v18 }
 0x311   :  { %985 = vst [vmem:[%s981_s1] sm:$0x1] %v984_v20  ;;  %s1059_s1 = scalar_lea.vmem [#allocation5], %s2430_s30  ;;  %v1073_v20 = vld [vmem:[#allocation4 + $0x13] sm:$0x1]  ;;  %s1083_s30 = scalar_lea.vmem [#allocation5], %s2454_s17 }
 0x312   :  { %s2653_s17 = sld [smem:[#allocation36_spill]] }
 0x318   :  { %v988_v21 = vld [vmem:[%s987_s4] sm:$0x1] }
 0x319   :  { %v990_v23 = vadd.f32 %v989_v22, %v988_v21 }
 0x31b   :  { %991 = vst [vmem:[%s987_s4] sm:$0x1] %v990_v23  ;;  %s1065_s4 = scalar_lea.vmem [#allocation5], %s2436_s11  ;;  %v1079_v23 = vld [vmem:[#allocation4 + $0x14] sm:$0x1]  ;;  %s1089_s11 = scalar_lea.vmem [#allocation5], %s2460_s16 }
 0x322   :  { %v994_v24 = vld [vmem:[%s993_s8] sm:$0x1] }
 0x323   :  { %v996_v25 = vadd.f32 %v995_v2, %v994_v24 }
 0x325   :  { %997 = vst [vmem:[%s993_s8] sm:$0x1] %v996_v25  ;;  %s1071_s8 = scalar_lea.vmem [#allocation5], %s2652_s18  ;;  %v1085_v25 = vld [vmem:[#allocation4 + $0x15] sm:$0x1] }
 0x32c   :  { %v1000_v26 = vld [vmem:[%s999_s12] sm:$0x1] }
 0x32d   :  { %v1002_v28 = vadd.f32 %v1001_v27, %v1000_v26 }
 0x32f   :  { %1003 = vst [vmem:[%s999_s12] sm:$0x1] %v1002_v28  ;;  %s1077_s12 = scalar_lea.vmem [#allocation5], %s2448_s19  ;;  %v1091_v28 = vld [vmem:[#allocation4 + $0x16] sm:$0x1] }
 0x336   :  { %v1006_v29 = vld [vmem:[%s1005_s24] sm:$0x1] }
 0x337   :  { %v1008_v31 = vadd.f32 %v1007_v30, %v1006_v29 }
 0x339   :  { %1009 = vst [vmem:[%s1005_s24] sm:$0x1] %v1008_v31  ;;  %s1095_s24 = scalar_lea.vmem [#allocation5], %s2466_s14  ;;  %v1097_v31 = vld [vmem:[#allocation4 + $0x17] sm:$0x1] }
 0x340   :  { %v1012_v35 = vld [vmem:[%s1011_s15] sm:$0x1] }
 0x341   :  { %v1014_v38 = vadd.f32 %v1013_v36, %v1012_v35 }
 0x343   :  { %1015 = vst [vmem:[%s1011_s15] sm:$0x1] %v1014_v38 }
 0x34a   :  { %v1018_v43 = vld [vmem:[%s1017_s2] sm:$0x1] }
 0x34b   :  { %v1020_v46 = vadd.f32 %v1019_v44, %v1018_v43  ;;  %v1999_v43 = vld [vmem:[#allocation16 + $0x28] sm:$0xff]   ;;  %v2000_v44 = vld [vmem:[#allocation16 + $0x20] sm:$0xff]  }
 0x34d   :  { %1021 = vst [vmem:[%s1017_s2] sm:$0x1] %v1020_v46  ;;  %v2002_v46 = vld [vmem:[#allocation16 + $0x10] sm:$0xff]  }
 0x354   :  { %v1024_v54 = vld [vmem:[%s1023_s25] sm:$0x1] }
 0x355   :  { %v1026_v57 = vadd.f32 %v1025_v52, %v1024_v54 }
 0x357   :  { %1027 = vst [vmem:[%s1023_s25] sm:$0x1] %v1026_v57  ;;  %s2655_s25 = sld [smem:[#allocation38_spill]] }
 0x35e   :  { %v1030_v61 = vld [vmem:[%s1029_s5] sm:$0x1] }
 0x35f   :  { %v1032_v63 = vadd.f32 %v1031_v62, %v1030_v61 }
 0x361   :  { %1033 = vst [vmem:[%s1029_s5] sm:$0x1] %v1032_v63 }
 0x368   :  { %v1036_v0 = vld [vmem:[%s1035_s23] sm:$0x1] }
 0x369   :  { %v1038_v3 = vadd.f32 %v1037_v1, %v1036_v0 }
 0x36b   :  { %1039 = vst [vmem:[%s1035_s23] sm:$0x1] %v1038_v3 }
 0x372   :  { %v1042_v4 = vld [vmem:[%s1041_s22] sm:$0x1] }
 0x373   :  { %v1044_v6 = vadd.f32 %v1043_v5, %v1042_v4 }
 0x375   :  { %1045 = vst [vmem:[%s1041_s22] sm:$0x1] %v1044_v6 }
 0x37c   :  { %v1048_v7 = vld [vmem:[%s1047_s13] sm:$0x1] }
 0x37d   :  { %v1050_v9 = vadd.f32 %v1049_v8, %v1048_v7 }
 0x37f   :  { %1051 = vst [vmem:[%s1047_s13] sm:$0x1] %v1050_v9 }
 0x386   :  { %v1054_v10 = vld [vmem:[%s1053_s28] sm:$0x1] }
 0x387   :  { %v1056_v12 = vadd.f32 %v1055_v11, %v1054_v10 }
 0x389   :  { %1057 = vst [vmem:[%s1053_s28] sm:$0x1] %v1056_v12 }
 0x390   :  { %v1060_v13 = vld [vmem:[%s1059_s1] sm:$0x1] }
 0x391   :  { %v1062_v15 = vadd.f32 %v1061_v14, %v1060_v13 }
 0x393   :  { %1063 = vst [vmem:[%s1059_s1] sm:$0x1] %v1062_v15  ;;  %v1693_v15 = vld [vmem:[%s2653_s17] ss:$0 sm:$0xff] }
 0x39a   :  { %v1066_v16 = vld [vmem:[%s1065_s4] sm:$0x1] }
 0x39b   :  { %v1068_v18 = vadd.f32 %v1067_v17, %v1066_v16 }
 0x39d   :  { %1069 = vst [vmem:[%s1065_s4] sm:$0x1] %v1068_v18  ;;  %v1694_v18 = vld [vmem:[%s2654_s3] ss:$0 sm:$0xff] }
 0x3a3   :  { %v1309_v37 = vpop.f32.mrf.mxu1 }
 0x3a4   :  { %v1072_v19 = vld [vmem:[%s1071_s8] sm:$0x1] }
 0x3a5   :  { %v1074_v21 = vadd.f32 %v1073_v20, %v1072_v19  ;;  %v1914_v38 = vpop.f32.mrf.mxu1 }
 0x3a7   :  { %1075 = vst [vmem:[%s1071_s8] sm:$0x1] %v1074_v21  ;;  %v1312_v39 = vpop.f32.mrf.mxu1 }
 0x3a9   :  { %v1915_v40 = vpop.f32.mrf.mxu1 }
 0x3ae   :  { %v1078_v22 = vld [vmem:[%s1077_s12] sm:$0x1] }
 0x3af   :  { %v1080_v24 = vadd.f32 %v1079_v23, %v1078_v22 }
 0x3b1   :  { %1081 = vst [vmem:[%s1077_s12] sm:$0x1] %v1080_v24 }
 0x3b8   :  { %v1084_v2 = vld [vmem:[%s1083_s30] sm:$0x1] }
 0x3b9   :  { %v1086_v26 = vadd.f32 %v1085_v25, %v1084_v2 }
 0x3bb   :  { %1087 = vst [vmem:[%s1083_s30] sm:$0x1] %v1086_v26 }
 0x3c2   :  { %v1090_v27 = vld [vmem:[%s1089_s11] sm:$0x1] }
 0x3c3   :  { %v1092_v29 = vadd.f32 %v1091_v28, %v1090_v27 }
 0x3c5   :  { %1093 = vst [vmem:[%s1089_s11] sm:$0x1] %v1092_v29 }
 0x3cc   :  { %v1096_v30 = vld [vmem:[%s1095_s24] sm:$0x1] }
 0x3cd   :  { %v1098_v32 = vadd.f32 %v1097_v31, %v1096_v30 }
 0x3cf   :  { %1099 = vst [vmem:[%s1095_s24] sm:$0x1] %v1098_v32 }
 0x3d6   :  { %v1103_v34 = vld [vmem:[#allocation5] sm:$0xff]  ;;  %v1104_v35 = vld [vmem:[#allocation5 + $0x8] sm:$0xff] }
 0x3d7   :  { %v1105_v36 = vpack.c.bf16 %v1104_v35, %v1103_v34 }
 0x3d9   :  { %1893 = vmatmul.mubr.bf16.vlgmr.msra.gmra.mxu0 %v1105_v36 }
 0x3da   :  { %1932 = vmatprep.mubr.msk.bf16.mxu0 %vm2166_vm0, %v2524_v33  ;;  %1917 = vmatpush3.bf16.msra.mxu0 %v1997_v41 }
 0x3db   :  { %1918 = vmatprep.subr.bf16.mxu0 %v2524_v33 }
 0x3de   :  { %1919 = vmatpush3.bf16.msra.mxu0 %v1998_v42 }
 0x3df   :  { %1920 = vmatprep.subr.bf16.mxu0 %v2524_v33 }
 0x3e2   :  { %1921 = vmatpush3.bf16.msra.mxu0 %v1999_v43 }
 0x3e3   :  { %1922 = vmatprep.subr.bf16.mxu0 %v2524_v33 }
 0x3e6   :  { %1923 = vmatpush3.bf16.msra.mxu0 %v2000_v44 }
 0x3e7   :  { %1924 = vmatprep.subr.bf16.mxu0 %v2524_v33 }
 0x3ea   :  { %1925 = vmatpush3.bf16.msra.mxu0 %v2001_v45 }
 0x3eb   :  { %1926 = vmatprep.subr.bf16.mxu0 %v2524_v33 }
 0x3ee   :  { %1927 = vmatpush3.bf16.msra.mxu0 %v2002_v46 }
 0x3ef   :  { %1928 = vmatprep.subr.bf16.mxu0 %v2524_v33 }
 0x3f2   :  { %1929 = vmatpush3.bf16.msra.mxu0 %v2003_v47 }
 0x3f3   :  { %1930 = vmatprep.subr.bf16.mxu0 %v2524_v33 }
 0x3f6   :  { %1931 = vmatpush3.bf16.msra.mxu0 %v2004_v48 }
 0x499   :  { %v1220_v49 = vpop.f32.mrf.mxu0 }
 0x49a   :  { %v1310_v54 = vadd.f32 %v1309_v37, %v1220_v49 }
 0x49b   :  { %v1894_v50 = vpop.f32.mrf.mxu0 }
 0x49d   :  { %v1223_v51 = vpop.f32.mrf.mxu0 }
 0x49e   :  { %v1313_v52 = vadd.f32 %v1312_v39, %v1223_v51 }
 0x49f   :  { %v1895_v53 = vpop.f32.mrf.mxu0 }
 0x4a0   :  { %v1319_v55 = vmul.f32 0.0, %v1313_v52 }
 0x4a2   :  { %v1320_v56 = vadd.f32 %v1319_v55, %v1310_v54 }
 0x4a4   :  { %v1321_v57 = vrot.slane %v1320_v56, 4 }
 0x4a6   :  { %v1322_v58 = vadd.f32 %v1321_v57, %v1320_v56  ;;  %v1704_v57 = vld [vmem:[%s2656_s7] ss:$0 sm:$0xff] }
 0x4a8   :  { %v1323_v59 = vrot.slane %v1322_v58, 2 }
 0x4aa   :  { %v1324_v60 = vadd.f32 %v1323_v59, %v1322_v58 }
 0x4ac   :  { %v1325_v61 = vrot.slane %v1324_v60, 1 }
 0x4ae   :  { %v1326_v62 = vadd.f32 %v1325_v61, %v1324_v60 }
 0x4b0   :  { %v1327_v63 = vmul.f32 0.125, %v1326_v62 }
 0x4b2   :  { %v1328_v0 = vsub.f32 %v1310_v54, %v1327_v63  ;;  %v1329_v1 = vsub.f32 %v1313_v52, %v1327_v63  ;;  %v1703_v54 = vld [vmem:[%s2655_s25] ss:$0 sm:$0xff] }
 0x4b4   :  { %v1331_v3 = vmul.f32 %v1329_v1, %v1329_v1  ;;  %v1330_v33 = vmul.f32 %v1328_v0, %v1328_v0 }
 0x4b6   :  { %v1333_v4 = vmul.f32 0.0, %v1331_v3 }
 0x4b8   :  { %v1334_v5 = vadd.f32 %v1333_v4, %v1330_v33 }
 0x4ba   :  { %v1335_v6 = vrot.slane %v1334_v5, 4 }
 0x4bc   :  { %v1336_v7 = vadd.f32 %v1335_v6, %v1334_v5 }
 0x4be   :  { %v1337_v8 = vrot.slane %v1336_v7, 2 }
 0x4c0   :  { %v1338_v9 = vadd.f32 %v1337_v8, %v1336_v7 }
 0x4c2   :  { %v1339_v10 = vrot.slane %v1338_v9, 1 }
 0x4c4   :  { %v1340_v11 = vadd.f32 %v1339_v10, %v1338_v9 }
 0x4c6   :  { %v1341_v12 = vmul.f32 0.125, %v1340_v11 }
 0x4c8   :  { %v1342_v13 = vadd.f32 1e-05, %v1341_v12 }
 0x4ca   :  { %2009 = vrsqrt.f32 %v1342_v13 }
 0x4d7   :  { %v2010_v14 = vpop.eup %2009 }
 0x4d8   :  { %v1344_v16 = vmul.f32 %v2010_v14, %v1328_v0  ;;  %v1345_v17 = vmul.f32 %v2010_v14, %v1329_v1 }
 0x4da   :  { %v1352_v19 = vmul.f32 %v1693_v15, %v1344_v16  ;;  %v1353_v20 = vmul.f32 %v1693_v15, %v1345_v17 }
 0x4dc   :  { %v1361_v21 = vadd.f32 %v1694_v18, %v1353_v20  ;;  %v1360_v22 = vadd.f32 %v1694_v18, %v1352_v19 }
 0x4de   :  { %v1363_v23 = vmax.f32 %v1361_v21, 0.0  ;;  %v1362_v24 = vmax.f32 %v1360_v22, 0.0 }
 0x4e0   :  { %v1364_v2 = vpack.c.bf16 %v1363_v23, %v1362_v24 }
 0x4e2   :  { %1933 = vmatmul.mubr.bf16.vlgmr.msra.gmra.mxu0 %v1364_v2 }
 0x5a2   :  { %v1463_v25 = vpop.f32.mrf.mxu0 }
 0x5a4   :  { %v1934_v26 = vpop.f32.mrf.mxu0 }
 0x5a6   :  { %v1466_v27 = vpop.f32.mrf.mxu0 }
 0x5a7   :  { %v1473_v28 = vmul.f32 0.0, %v1466_v27 }
 0x5a8   :  { %v1935_v29 = vpop.f32.mrf.mxu0 }
 0x5a9   :  { %v1474_v30 = vadd.f32 %v1473_v28, %v1463_v25 }
 0x5ab   :  { %v1475_v31 = vrot.slane %v1474_v30, 4 }
 0x5ad   :  { %v1476_v32 = vadd.f32 %v1475_v31, %v1474_v30 }
 0x5af   :  { %v1477_v34 = vrot.slane %v1476_v32, 2 }
 0x5b1   :  { %v1478_v35 = vadd.f32 %v1477_v34, %v1476_v32 }
 0x5b3   :  { %v1479_v36 = vrot.slane %v1478_v35, 1 }
 0x5b5   :  { %v1480_v37 = vadd.f32 %v1479_v36, %v1478_v35 }
 0x5b7   :  { %v1481_v38 = vmul.f32 0.125, %v1480_v37 }
 0x5b9   :  { %v1482_v39 = vsub.f32 %v1463_v25, %v1481_v38  ;;  %v1483_v40 = vsub.f32 %v1466_v27, %v1481_v38 }
 0x5bb   :  { %v1485_v41 = vmul.f32 %v1483_v40, %v1483_v40  ;;  %v1484_v42 = vmul.f32 %v1482_v39, %v1482_v39 }
 0x5bd   :  { %v1487_v43 = vmul.f32 0.0, %v1485_v41 }
 0x5bf   :  { %v1488_v44 = vadd.f32 %v1487_v43, %v1484_v42 }
 0x5c1   :  { %v1489_v45 = vrot.slane %v1488_v44, 4 }
 0x5c3   :  { %v1490_v46 = vadd.f32 %v1489_v45, %v1488_v44 }
 0x5c5   :  { %v1491_v47 = vrot.slane %v1490_v46, 2 }
 0x5c7   :  { %v1492_v48 = vadd.f32 %v1491_v47, %v1490_v46 }
 0x5c9   :  { %v1493_v49 = vrot.slane %v1492_v48, 1 }
 0x5cb   :  { %v1494_v50 = vadd.f32 %v1493_v49, %v1492_v48 }
 0x5cd   :  { %v1495_v51 = vmul.f32 0.125, %v1494_v50 }
 0x5cf   :  { %v1496_v52 = vadd.f32 1e-05, %v1495_v51 }
 0x5d1   :  { %2011 = vrsqrt.f32 %v1496_v52 }
 0x5de   :  { %v2012_v53 = vpop.eup %2011 }
 0x5df   :  { %v1498_v55 = vmul.f32 %v2012_v53, %v1482_v39  ;;  %v1499_v56 = vmul.f32 %v2012_v53, %v1483_v40 }
 0x5e1   :  { %v1506_v58 = vmul.f32 %v1703_v54, %v1498_v55  ;;  %v1507_v59 = vmul.f32 %v1703_v54, %v1499_v56 }
 0x5e3   :  { %v1514_v60 = vadd.f32 %v1704_v57, %v1506_v58  ;;  %v1515_v61 = vadd.f32 %v1704_v57, %v1507_v59 }
 0x5e5   :  { %v1516_v62 = vmax.f32 %v1514_v60, 0.0  ;;  %v1517_v63 = vmax.f32 %v1515_v61, 0.0 }
 0x5e7   :  { %v1726_v0 = vpack.c.bf16 %v1517_v63, %v1516_v62 }
 0x5e9   :  { %1727 = vst [vmem:[%s2657_s9] sm:$0xff] %v1726_v0  }
 0x5ea   :  { %1536 = vsyncpa [#allocation7], 1 }
 0x5eb   :  { %1537 = vsyncpa [#allocation11], 1 }
 0x5ec   :  { %1538 = vsyncpa [#allocation14], 1 }
 0x5ed   :  { %1539 = vsyncpa [#allocation17], 1 }
 0x5ee   :  { %1540 = vsyncpa [#allocation8], 1 }

</bundles_post_ra>
